<compile_context>
chip_gen: v5e
topology: v5e:2x2
jax: 0.10.0
libtpu: 0.0.40
codegen_flags: <defaults>
</compile_context>

<pallas_src>
import functools

import jax
import jax.numpy as jnp
from jax.experimental import pallas as pl
from jax.experimental.pallas import tpu as pltpu

# ----------------------------- hyper-parameters ------------------------------
vocab_size = 65
block_size = 8
n_embd = 32
n_heads = 4
n_layers = 2
dropout = 0.0                      # eval-mode -> identity
head_size = n_embd // n_heads
VPAD = 128                         # lane-dense padded vocab / one-hot width
HID = 4 * n_embd                   # FFN hidden width (=128)

# ---- weight-slab row layout (bf16, 128 columns) ----
#   rows [0, 128)              : token embedding table (vocab padded to 128 rows)
#   per layer l, base = 128 + l*(2C + 4C):
#     rows [base,      base+C) : cols [0,C)=wq*scale [C,2C)=wk [2C,3C)=wv [3C,4C)=wproj
#     rows [base+C,  base+2C)  : w1  (C, 4C)
#     rows [base+2C, base+2C+4C): w2 (4C, C)   (cols C..128 zero padding)
#   rows [LM0, LM0+C)          : lm_head weight (C, VPAD)
W_LAYER_ROWS = 2 * n_embd + HID
W_LM0 = VPAD + n_layers * W_LAYER_ROWS

# ---- param-slab row layout (f32, 128 columns) ----
#   rows [0, B*T)     : positional embedding pre-tiled to (B*T, C)
#   per layer l, pbase = B*T + 7*l:
#     +0 ln1_g, +1 ln1_b, +2 bproj, +3 ln2_g, +4 ln2_b, +5 b2, +6 b1 (128 wide)
#   then lnf_g, lnf_b, lm_b (128 wide)
P_LAYER_ROWS = 7


def _layernorm(x, g, b, eps=1e-5):
    mu = jnp.mean(x, axis=-1, keepdims=True)
    var = jnp.mean((x - mu) ** 2, axis=-1, keepdims=True)
    return (x - mu) * jax.lax.rsqrt(var + eps) * g + b


# --------------------------------- kernel ------------------------------------
def _fused_forward_kernel(B, T, idx_ref, w_ref, p_ref, out_ref):
    C = n_embd
    hs = head_size
    H = n_heads
    BT = B * T

    # ---- token embedding gather as a one-hot matmul (one-hot exact in bf16) ----
    ids = idx_ref[...]                                             # (BT, 1) int32
    viota = jax.lax.broadcasted_iota(jnp.int32, (BT, VPAD), 1)
    onehot = (ids == viota).astype(jnp.bfloat16)                   # (BT, 128)
    x = jnp.dot(onehot, w_ref[0:VPAD, 0:C],
                preferred_element_type=jnp.float32)                # (BT, C) f32

    # ---- positional embedding (pre-tiled to (BT, C) at pack time) ----
    x = x + p_ref[0:BT, 0:C]

    # ---- additive causal bias, built + broadcast ONCE, reused everywhere ----
    row = jax.lax.broadcasted_iota(jnp.int32, (T, T), 0)
    col = jax.lax.broadcasted_iota(jnp.int32, (T, T), 1)
    causal = jnp.where(row >= col, 0.0, -1e30).astype(jnp.float32)
    causal_b = jnp.broadcast_to(causal[None, :, :], (B, T, T))     # (B, T, T)

    # ---- transformer blocks (static loop; all weight slices are static) ----
    for l in range(n_layers):
        wbase = VPAD + l * W_LAYER_ROWS
        pbase = BT + l * P_LAYER_ROWS

        # -- multi-head self-attention on ln1(x) --
        ln1g = p_ref[pbase + 0:pbase + 1, 0:C]
        ln1b = p_ref[pbase + 1:pbase + 2, 0:C]
        bproj = p_ref[pbase + 2:pbase + 3, 0:C]
        xn = _layernorm(x, ln1g, ln1b)                             # (BT, C) f32
        xnb = xn.astype(jnp.bfloat16)

        sa = jnp.zeros((BT, C), jnp.float32)
        for h in range(H):
            c0 = h * hs
            # per-head Q/K/V straight from per-head weight slices (no activation slicing)
            q = jnp.dot(xnb, w_ref[wbase:wbase + C, c0:c0 + hs],
                        preferred_element_type=jnp.float32).reshape(B, T, hs)
            k = jnp.dot(xnb, w_ref[wbase:wbase + C, C + c0:C + c0 + hs],
                        preferred_element_type=jnp.float32).reshape(B, T, hs)
            v = jnp.dot(xnb, w_ref[wbase:wbase + C, 2 * C + c0:2 * C + c0 + hs],
                        preferred_element_type=jnp.float32).reshape(B, T, hs)
            s = jnp.einsum('btd,bsd->bts', q, k,
                           preferred_element_type=jnp.float32) + causal_b
            s = s - jnp.max(s, axis=-1, keepdims=True)
            e = jnp.exp(s)
            p = e * pl.reciprocal(jnp.sum(e, axis=-1, keepdims=True), approx=True)
            ctx = jnp.einsum('bts,bsd->btd', p, v,
                             preferred_element_type=jnp.float32).reshape(BT, hs)
            # head concat folded into the output projection (per-head accumulate)
            sa = sa + jnp.dot(ctx.astype(jnp.bfloat16),
                              w_ref[wbase + c0:wbase + c0 + hs, 3 * C:4 * C],
                              preferred_element_type=jnp.float32)
        x = x + sa + bproj                                         # residual 1

        # -- feed-forward on ln2(x) --
        ln2g = p_ref[pbase + 3:pbase + 4, 0:C]
        ln2b = p_ref[pbase + 4:pbase + 5, 0:C]
        b2 = p_ref[pbase + 5:pbase + 6, 0:C]
        b1 = p_ref[pbase + 6:pbase + 7, 0:HID]
        xn2 = _layernorm(x, ln2g, ln2b)
        hdn = jnp.dot(xn2.astype(jnp.bfloat16),
                      w_ref[wbase + C:wbase + 2 * C, 0:HID],
                      preferred_element_type=jnp.float32) + b1
        hdn = jnp.maximum(hdn, 0.0)                                # ReLU
        ff = jnp.dot(hdn.astype(jnp.bfloat16),
                     w_ref[wbase + 2 * C:wbase + 2 * C + HID, 0:C],
                     preferred_element_type=jnp.float32) + b2
        x = x + ff                                                 # residual 2

    # ---- final layernorm + lm_head (128-lane padded vocab, lane-dense store) ----
    pf = BT + n_layers * P_LAYER_ROWS
    xn = _layernorm(x, p_ref[pf:pf + 1, 0:C], p_ref[pf + 1:pf + 2, 0:C])
    out_ref[...] = jnp.dot(xn.astype(jnp.bfloat16), w_ref[W_LM0:W_LM0 + C, 0:VPAD],
                           preferred_element_type=jnp.float32) + p_ref[pf + 2:pf + 3, 0:VPAD]


# ------------------------------- pallas wrapper -------------------------------
_VMEM = pl.BlockSpec(memory_space=pltpu.MemorySpace.VMEM)


@jax.jit
def drakegpt_forward(packed, idx):
    """idx: (B, T) int32 token ids -> logits (B, T, vocab_size)."""
    B, T = idx.shape
    idx_flat = idx.reshape(B * T, 1).astype(jnp.int32)
    logits_pad = pl.pallas_call(
        functools.partial(_fused_forward_kernel, B, T),
        out_shape=jax.ShapeDtypeStruct((B * T, VPAD), jnp.float32),
        in_specs=[_VMEM, _VMEM, _VMEM],
        out_specs=_VMEM,
    )(idx_flat, packed['wslab'], packed['pslab'])
    # TODO(synk): cross-entropy loss (targets path) and generate() multinomial
    # sampling not implemented; this is the targets=None inference forward.
    return logits_pad[:, :vocab_size].reshape(B, T, vocab_size)


# -------------------------------- parameters ----------------------------------
def init_params(key):
    """Reference-form parameters (mirrors the PyTorch module's tensors;
    wq/wk/wv columns [h*hs:(h+1)*hs] are head h's per-head weights)."""
    def norm(k, shape, s=0.02):
        return (s * jax.random.normal(k, shape)).astype(jnp.float32)

    keys = jax.random.split(key, 3 + n_layers)
    params = {
        'tok_emb': norm(keys[0], (vocab_size, n_embd)),
        'pos_emb': norm(keys[1], (block_size, n_embd)),
        'lm_w': norm(keys[2], (n_embd, vocab_size)),     # pre-transposed: y = x @ W
        'lm_b': jnp.zeros((1, vocab_size), jnp.float32),
        'lnf_g': jnp.ones((1, n_embd), jnp.float32),
        'lnf_b': jnp.zeros((1, n_embd), jnp.float32),
        'layers': [],
    }
    for l in range(n_layers):
        kk = jax.random.split(keys[3 + l], 6)
        params['layers'].append(dict(
            ln1_g=jnp.ones((1, n_embd), jnp.float32),
            ln1_b=jnp.zeros((1, n_embd), jnp.float32),
            wq=norm(kk[0], (n_embd, n_heads * head_size)),
            wk=norm(kk[1], (n_embd, n_heads * head_size)),
            wv=norm(kk[2], (n_embd, n_heads * head_size)),
            wproj=norm(kk[3], (n_heads * head_size, n_embd)),
            bproj=jnp.zeros((1, n_embd), jnp.float32),
            ln2_g=jnp.ones((1, n_embd), jnp.float32),
            ln2_b=jnp.zeros((1, n_embd), jnp.float32),
            w1=norm(kk[4], (n_embd, 4 * n_embd)),
            b1=jnp.zeros((1, 4 * n_embd), jnp.float32),
            w2=norm(kk[5], (4 * n_embd, n_embd)),
            b2=jnp.zeros((1, n_embd), jnp.float32),
        ))
    return params


def _row128(v):
    v = v.reshape(1, -1)
    return jnp.pad(v, ((0, 0), (0, 128 - v.shape[1])))


def pack_params(p, batch_size):
    """Pack reference-form params into 2 slabs: one bf16 matmul-weight slab and
    one f32 small-param slab (see row-layout comments at top).  The C**-0.5
    attention scale is folded into wq; lm_head / token table padded to 128."""
    C = n_embd
    scale = n_embd ** -0.5                              # reference uses C**-0.5

    # ---- bf16 weight slab ----
    wrows = [jnp.pad(jnp.pad(p['tok_emb'], ((0, VPAD - vocab_size), (0, 0))),
                     ((0, 0), (0, 128 - C)))]                           # (128, 128)
    for lp in p['layers']:
        wrows.append(jnp.concatenate(
            [lp['wq'] * scale, lp['wk'], lp['wv'], lp['wproj']], axis=1))  # (C, 128)
        wrows.append(lp['w1'])                                          # (C, 4C)
        wrows.append(jnp.pad(lp['w2'], ((0, 0), (0, 128 - C))))         # (4C, 128)
    wrows.append(jnp.pad(p['lm_w'], ((0, 0), (0, VPAD - vocab_size))))  # (C, 128)
    wslab = jnp.concatenate(wrows, axis=0).astype(jnp.bfloat16)         # (544, 128)

    # ---- f32 small-param slab ----
    pos_tiled = jnp.tile(p['pos_emb'], (batch_size, 1))                 # (B*T, C)
    prows = [jnp.pad(pos_tiled, ((0, 0), (0, 128 - C)))]
    for lp in p['layers']:
        prows += [_row128(lp['ln1_g']), _row128(lp['ln1_b']), _row128(lp['bproj']),
                  _row128(lp['ln2_g']), _row128(lp['ln2_b']), _row128(lp['b2']),
                  _row128(lp['b1'])]
    prows += [_row128(p['lnf_g']), _row128(p['lnf_b']), _row128(p['lm_b'])]
    pslab = jnp.concatenate(prows, axis=0).astype(jnp.float32)
    pad_rows = (-pslab.shape[0]) % 8
    pslab = jnp.pad(pslab, ((0, pad_rows), (0, 0)))

    return dict(wslab=wslab, pslab=pslab)


# ----------------------------------- main --------------------------------------
if __name__ == "__main__":
    key = jax.random.PRNGKey(0)
    pkey, ikey = jax.random.split(key)
    B = 2
    params = init_params(pkey)
    packed = pack_params(params, batch_size=B)
    idx = jax.random.randint(ikey, (B, block_size), 0, vocab_size, dtype=jnp.int32)
    logits = drakegpt_forward(packed, idx)
    logits = jax.block_until_ready(logits)
    assert logits.shape == (B, block_size, vocab_size)
    assert bool(jnp.all(jnp.isfinite(logits)))
    print("KERNEL_OK")
</pallas_src>

<mosaic_0001>
module attributes {stable_mosaic.version = 11 : i64} {
  func.func @_fused_forward_kernel(%arg0: memref<16x1xi32, #tpu.memory_space<vmem>>, %arg1: memref<544x128xbf16, #tpu.memory_space<vmem>>, %arg2: memref<40x128xf32, #tpu.memory_space<vmem>>, %arg3: memref<16x128xf32, #tpu.memory_space<vmem>>) attributes {dimension_semantics = [], scalar_prefetch = 0 : i64, scratch_operands = 0 : i64, tpu.core_type = #tpu.core_type<tc>} {
    %c0 = arith.constant 0 : index
    %c0_0 = arith.constant 0 : index
    %0 = vector.load %arg0[%c0, %c0_0] : memref<16x1xi32, #tpu.memory_space<vmem>>, vector<16x1xi32>
    %1 = tpu.iota {dimensions = array<i32: 1>} : vector<16x128xi32>
    %2 = vector.broadcast %0 : vector<16x1xi32> to vector<16x128xi32>
    %3 = arith.cmpi eq, %2, %1 : vector<16x128xi32>
    %4 = arith.extui %3 : vector<16x128xi1> to vector<16x128xi32>
    %5 = arith.sitofp %4 : vector<16x128xi32> to vector<16x128xf32>
    %6 = arith.truncf %5 : vector<16x128xf32> to vector<16x128xbf16>
    %c0_1 = arith.constant 0 : index
    %c0_2 = arith.constant 0 : index
    %7 = vector.load %arg1[%c0_1, %c0_2] : memref<544x128xbf16, #tpu.memory_space<vmem>>, vector<128x32xbf16>
    %cst = arith.constant dense<0.000000e+00> : vector<16x32xf32>
    %8 = tpu.matmul %6, %7, %cst {dimension_numbers = #tpu.dot_dimension_numbers<[1], [0], [0], [1], [0, 0, 1, 1], [], []>} : vector<16x128xbf16>, vector<128x32xbf16>, vector<16x32xf32> -> vector<16x32xf32>
    %c0_3 = arith.constant 0 : index
    %c0_4 = arith.constant 0 : index
    %9 = vector.load %arg2[%c0_3, %c0_4] : memref<40x128xf32, #tpu.memory_space<vmem>>, vector<16x32xf32>
    %10 = arith.addf %8, %9 : vector<16x32xf32>
    %11 = tpu.iota {dimensions = array<i32: 0>} : vector<8x8xi32>
    %12 = tpu.iota {dimensions = array<i32: 1>} : vector<8x8xi32>
    %13 = arith.cmpi sge, %11, %12 : vector<8x8xi32>
    %cst_5 = arith.constant 0.000000e+00 : f32
    %cst_6 = arith.constant -1.000000e+30 : f32
    %14 = vector.broadcast %cst_5 : f32 to vector<8x8xf32>
    %15 = vector.broadcast %cst_6 : f32 to vector<8x8xf32>
    %16 = arith.select %13, %14, %15 : vector<8x8xi1>, vector<8x8xf32>
    %17 = vector.shape_cast %16 : vector<8x8xf32> to vector<1x8x8xf32>
    %18 = vector.shape_cast %17 : vector<1x8x8xf32> to vector<1x8x8xf32>
    %19 = vector.broadcast %18 : vector<1x8x8xf32> to vector<2x8x8xf32>
    %c16 = arith.constant 16 : index
    %c0_7 = arith.constant 0 : index
    %20 = vector.load %arg2[%c16, %c0_7] : memref<40x128xf32, #tpu.memory_space<vmem>>, vector<1x32xf32>
    %c17 = arith.constant 17 : index
    %c0_8 = arith.constant 0 : index
    %21 = vector.load %arg2[%c17, %c0_8] : memref<40x128xf32, #tpu.memory_space<vmem>>, vector<1x32xf32>
    %c18 = arith.constant 18 : index
    %c0_9 = arith.constant 0 : index
    %22 = vector.load %arg2[%c18, %c0_9] : memref<40x128xf32, #tpu.memory_space<vmem>>, vector<1x32xf32>
    %cst_10 = arith.constant dense<0.000000e+00> : vector<16xf32>
    %23 = vector.multi_reduction <add>, %10, %cst_10 [1] : vector<16x32xf32> to vector<16xf32>
    %24 = vector.shape_cast %23 : vector<16xf32> to vector<16x1xf32>
    %cst_11 = arith.constant 3.200000e+01 : f32
    %25 = vector.broadcast %cst_11 : f32 to vector<16x1xf32>
    %26 = arith.divf %24, %25 : vector<16x1xf32>
    %27 = vector.broadcast %26 : vector<16x1xf32> to vector<16x32xf32>
    %28 = arith.subf %10, %27 : vector<16x32xf32>
    %29 = arith.mulf %28, %28 : vector<16x32xf32>
    %cst_12 = arith.constant dense<0.000000e+00> : vector<16xf32>
    %30 = vector.multi_reduction <add>, %29, %cst_12 [1] : vector<16x32xf32> to vector<16xf32>
    %31 = vector.shape_cast %30 : vector<16xf32> to vector<16x1xf32>
    %cst_13 = arith.constant 3.200000e+01 : f32
    %32 = vector.broadcast %cst_13 : f32 to vector<16x1xf32>
    %33 = arith.divf %31, %32 : vector<16x1xf32>
    %34 = vector.broadcast %26 : vector<16x1xf32> to vector<16x32xf32>
    %35 = arith.subf %10, %34 : vector<16x32xf32>
    %cst_14 = arith.constant 9.99999974E-6 : f32
    %36 = vector.broadcast %cst_14 : f32 to vector<16x1xf32>
    %37 = arith.addf %33, %36 : vector<16x1xf32>
    %38 = math.rsqrt %37 : vector<16x1xf32>
    %39 = vector.broadcast %38 : vector<16x1xf32> to vector<16x32xf32>
    %40 = arith.mulf %35, %39 : vector<16x32xf32>
    %41 = vector.broadcast %20 : vector<1x32xf32> to vector<16x32xf32>
    %42 = arith.mulf %40, %41 : vector<16x32xf32>
    %43 = vector.broadcast %21 : vector<1x32xf32> to vector<16x32xf32>
    %44 = arith.addf %42, %43 : vector<16x32xf32>
    %45 = arith.truncf %44 : vector<16x32xf32> to vector<16x32xbf16>
    %cst_15 = arith.constant 0.000000e+00 : f32
    %46 = vector.broadcast %cst_15 : f32 to vector<16x32xf32>
    %c128 = arith.constant 128 : index
    %c0_16 = arith.constant 0 : index
    %47 = vector.load %arg1[%c128, %c0_16] : memref<544x128xbf16, #tpu.memory_space<vmem>>, vector<32x8xbf16>
    %cst_17 = arith.constant dense<0.000000e+00> : vector<16x8xf32>
    %48 = tpu.matmul %45, %47, %cst_17 {dimension_numbers = #tpu.dot_dimension_numbers<[1], [0], [0], [1], [0, 0, 1, 1], [], []>} : vector<16x32xbf16>, vector<32x8xbf16>, vector<16x8xf32> -> vector<16x8xf32>
    %49 = vector.shape_cast %48 : vector<16x8xf32> to vector<2x8x8xf32>
    %c128_18 = arith.constant 128 : index
    %c32 = arith.constant 32 : index
    %50 = vector.load %arg1[%c128_18, %c32] : memref<544x128xbf16, #tpu.memory_space<vmem>>, vector<32x8xbf16>
    %cst_19 = arith.constant dense<0.000000e+00> : vector<16x8xf32>
    %51 = tpu.matmul %45, %50, %cst_19 {dimension_numbers = #tpu.dot_dimension_numbers<[1], [0], [0], [1], [0, 0, 1, 1], [], []>} : vector<16x32xbf16>, vector<32x8xbf16>, vector<16x8xf32> -> vector<16x8xf32>
    %52 = vector.shape_cast %51 : vector<16x8xf32> to vector<2x8x8xf32>
    %c128_20 = arith.constant 128 : index
    %c64 = arith.constant 64 : index
    %53 = vector.load %arg1[%c128_20, %c64] : memref<544x128xbf16, #tpu.memory_space<vmem>>, vector<32x8xbf16>
    %cst_21 = arith.constant dense<0.000000e+00> : vector<16x8xf32>
    %54 = tpu.matmul %45, %53, %cst_21 {dimension_numbers = #tpu.dot_dimension_numbers<[1], [0], [0], [1], [0, 0, 1, 1], [], []>} : vector<16x32xbf16>, vector<32x8xbf16>, vector<16x8xf32> -> vector<16x8xf32>
    %55 = vector.shape_cast %54 : vector<16x8xf32> to vector<2x8x8xf32>
    "tpu.trace_start"() <{level = 10 : i32, message = "btd,bsd->bts"}> : () -> ()
    %cst_22 = arith.constant dense<0.000000e+00> : vector<2x8x8xf32>
    %56 = tpu.matmul %49, %52, %cst_22 {dimension_numbers = #tpu.dot_dimension_numbers<[2], [2], [1], [1], [0, 0, 0, 1, 1, 1], [0], [0]>} : vector<2x8x8xf32>, vector<2x8x8xf32>, vector<2x8x8xf32> -> vector<2x8x8xf32>
    "tpu.trace_stop"() : () -> ()
    %57 = arith.addf %56, %19 : vector<2x8x8xf32>
    %cst_23 = arith.constant dense<0xFF800000> : vector<2x8xf32>
    %58 = vector.multi_reduction <maximumf>, %57, %cst_23 [2] : vector<2x8x8xf32> to vector<2x8xf32>
    %59 = vector.shape_cast %58 : vector<2x8xf32> to vector<2x8x1xf32>
    %60 = vector.broadcast %59 : vector<2x8x1xf32> to vector<2x8x8xf32>
    %61 = arith.subf %57, %60 : vector<2x8x8xf32>
    %62 = math.exp %61 : vector<2x8x8xf32>
    %cst_24 = arith.constant dense<0.000000e+00> : vector<2x8xf32>
    %63 = vector.multi_reduction <add>, %62, %cst_24 [2] : vector<2x8x8xf32> to vector<2x8xf32>
    %64 = vector.shape_cast %63 : vector<2x8xf32> to vector<2x8x1xf32>
    %65 = tpu.reciprocal %64 {approx = true} : vector<2x8x1xf32> -> vector<2x8x1xf32>
    %66 = vector.broadcast %65 : vector<2x8x1xf32> to vector<2x8x8xf32>
    %67 = arith.mulf %62, %66 : vector<2x8x8xf32>
    "tpu.trace_start"() <{level = 10 : i32, message = "bts,bsd->btd"}> : () -> ()
    %cst_25 = arith.constant dense<0.000000e+00> : vector<2x8x8xf32>
    %68 = tpu.matmul %67, %55, %cst_25 {dimension_numbers = #tpu.dot_dimension_numbers<[2], [1], [1], [2], [0, 0, 0, 1, 1, 2], [0], [0]>} : vector<2x8x8xf32>, vector<2x8x8xf32>, vector<2x8x8xf32> -> vector<2x8x8xf32>
    "tpu.trace_stop"() : () -> ()
    %69 = vector.shape_cast %68 : vector<2x8x8xf32> to vector<16x8xf32>
    %70 = arith.truncf %69 : vector<16x8xf32> to vector<16x8xbf16>
    %c128_26 = arith.constant 128 : index
    %c96 = arith.constant 96 : index
    %71 = vector.load %arg1[%c128_26, %c96] : memref<544x128xbf16, #tpu.memory_space<vmem>>, vector<8x32xbf16>
    %cst_27 = arith.constant dense<0.000000e+00> : vector<16x32xf32>
    %72 = tpu.matmul %70, %71, %cst_27 {dimension_numbers = #tpu.dot_dimension_numbers<[1], [0], [0], [1], [0, 0, 1, 1], [], []>} : vector<16x8xbf16>, vector<8x32xbf16>, vector<16x32xf32> -> vector<16x32xf32>
    %73 = arith.addf %46, %72 : vector<16x32xf32>
    %c128_28 = arith.constant 128 : index
    %c8 = arith.constant 8 : index
    %74 = vector.load %arg1[%c128_28, %c8] : memref<544x128xbf16, #tpu.memory_space<vmem>>, vector<32x8xbf16>
    %cst_29 = arith.constant dense<0.000000e+00> : vector<16x8xf32>
    %75 = tpu.matmul %45, %74, %cst_29 {dimension_numbers = #tpu.dot_dimension_numbers<[1], [0], [0], [1], [0, 0, 1, 1], [], []>} : vector<16x32xbf16>, vector<32x8xbf16>, vector<16x8xf32> -> vector<16x8xf32>
    %76 = vector.shape_cast %75 : vector<16x8xf32> to vector<2x8x8xf32>
    %c128_30 = arith.constant 128 : index
    %c40 = arith.constant 40 : index
    %77 = vector.load %arg1[%c128_30, %c40] : memref<544x128xbf16, #tpu.memory_space<vmem>>, vector<32x8xbf16>
    %cst_31 = arith.constant dense<0.000000e+00> : vector<16x8xf32>
    %78 = tpu.matmul %45, %77, %cst_31 {dimension_numbers = #tpu.dot_dimension_numbers<[1], [0], [0], [1], [0, 0, 1, 1], [], []>} : vector<16x32xbf16>, vector<32x8xbf16>, vector<16x8xf32> -> vector<16x8xf32>
    %79 = vector.shape_cast %78 : vector<16x8xf32> to vector<2x8x8xf32>
    %c128_32 = arith.constant 128 : index
    %c72 = arith.constant 72 : index
    %80 = vector.load %arg1[%c128_32, %c72] : memref<544x128xbf16, #tpu.memory_space<vmem>>, vector<32x8xbf16>
    %cst_33 = arith.constant dense<0.000000e+00> : vector<16x8xf32>
    %81 = tpu.matmul %45, %80, %cst_33 {dimension_numbers = #tpu.dot_dimension_numbers<[1], [0], [0], [1], [0, 0, 1, 1], [], []>} : vector<16x32xbf16>, vector<32x8xbf16>, vector<16x8xf32> -> vector<16x8xf32>
    %82 = vector.shape_cast %81 : vector<16x8xf32> to vector<2x8x8xf32>
    "tpu.trace_start"() <{level = 10 : i32, message = "btd,bsd->bts"}> : () -> ()
    %cst_34 = arith.constant dense<0.000000e+00> : vector<2x8x8xf32>
    %83 = tpu.matmul %76, %79, %cst_34 {dimension_numbers = #tpu.dot_dimension_numbers<[2], [2], [1], [1], [0, 0, 0, 1, 1, 1], [0], [0]>} : vector<2x8x8xf32>, vector<2x8x8xf32>, vector<2x8x8xf32> -> vector<2x8x8xf32>
    "tpu.trace_stop"() : () -> ()
    %84 = arith.addf %83, %19 : vector<2x8x8xf32>
    %cst_35 = arith.constant dense<0xFF800000> : vector<2x8xf32>
    %85 = vector.multi_reduction <maximumf>, %84, %cst_35 [2] : vector<2x8x8xf32> to vector<2x8xf32>
    %86 = vector.shape_cast %85 : vector<2x8xf32> to vector<2x8x1xf32>
    %87 = vector.broadcast %86 : vector<2x8x1xf32> to vector<2x8x8xf32>
    %88 = arith.subf %84, %87 : vector<2x8x8xf32>
    %89 = math.exp %88 : vector<2x8x8xf32>
    %cst_36 = arith.constant dense<0.000000e+00> : vector<2x8xf32>
    %90 = vector.multi_reduction <add>, %89, %cst_36 [2] : vector<2x8x8xf32> to vector<2x8xf32>
    %91 = vector.shape_cast %90 : vector<2x8xf32> to vector<2x8x1xf32>
    %92 = tpu.reciprocal %91 {approx = true} : vector<2x8x1xf32> -> vector<2x8x1xf32>
    %93 = vector.broadcast %92 : vector<2x8x1xf32> to vector<2x8x8xf32>
    %94 = arith.mulf %89, %93 : vector<2x8x8xf32>
    "tpu.trace_start"() <{level = 10 : i32, message = "bts,bsd->btd"}> : () -> ()
    %cst_37 = arith.constant dense<0.000000e+00> : vector<2x8x8xf32>
    %95 = tpu.matmul %94, %82, %cst_37 {dimension_numbers = #tpu.dot_dimension_numbers<[2], [1], [1], [2], [0, 0, 0, 1, 1, 2], [0], [0]>} : vector<2x8x8xf32>, vector<2x8x8xf32>, vector<2x8x8xf32> -> vector<2x8x8xf32>
    "tpu.trace_stop"() : () -> ()
    %96 = vector.shape_cast %95 : vector<2x8x8xf32> to vector<16x8xf32>
    %97 = arith.truncf %96 : vector<16x8xf32> to vector<16x8xbf16>
    %c136 = arith.constant 136 : index
    %c96_38 = arith.constant 96 : index
    %98 = vector.load %arg1[%c136, %c96_38] : memref<544x128xbf16, #tpu.memory_space<vmem>>, vector<8x32xbf16>
    %cst_39 = arith.constant dense<0.000000e+00> : vector<16x32xf32>
    %99 = tpu.matmul %97, %98, %cst_39 {dimension_numbers = #tpu.dot_dimension_numbers<[1], [0], [0], [1], [0, 0, 1, 1], [], []>} : vector<16x8xbf16>, vector<8x32xbf16>, vector<16x32xf32> -> vector<16x32xf32>
    %100 = arith.addf %73, %99 : vector<16x32xf32>
    %c128_40 = arith.constant 128 : index
    %c16_41 = arith.constant 16 : index
    %101 = vector.load %arg1[%c128_40, %c16_41] : memref<544x128xbf16, #tpu.memory_space<vmem>>, vector<32x8xbf16>
    %cst_42 = arith.constant dense<0.000000e+00> : vector<16x8xf32>
    %102 = tpu.matmul %45, %101, %cst_42 {dimension_numbers = #tpu.dot_dimension_numbers<[1], [0], [0], [1], [0, 0, 1, 1], [], []>} : vector<16x32xbf16>, vector<32x8xbf16>, vector<16x8xf32> -> vector<16x8xf32>
    %103 = vector.shape_cast %102 : vector<16x8xf32> to vector<2x8x8xf32>
    %c128_43 = arith.constant 128 : index
    %c48 = arith.constant 48 : index
    %104 = vector.load %arg1[%c128_43, %c48] : memref<544x128xbf16, #tpu.memory_space<vmem>>, vector<32x8xbf16>
    %cst_44 = arith.constant dense<0.000000e+00> : vector<16x8xf32>
    %105 = tpu.matmul %45, %104, %cst_44 {dimension_numbers = #tpu.dot_dimension_numbers<[1], [0], [0], [1], [0, 0, 1, 1], [], []>} : vector<16x32xbf16>, vector<32x8xbf16>, vector<16x8xf32> -> vector<16x8xf32>
    %106 = vector.shape_cast %105 : vector<16x8xf32> to vector<2x8x8xf32>
    %c128_45 = arith.constant 128 : index
    %c80 = arith.constant 80 : index
    %107 = vector.load %arg1[%c128_45, %c80] : memref<544x128xbf16, #tpu.memory_space<vmem>>, vector<32x8xbf16>
    %cst_46 = arith.constant dense<0.000000e+00> : vector<16x8xf32>
    %108 = tpu.matmul %45, %107, %cst_46 {dimension_numbers = #tpu.dot_dimension_numbers<[1], [0], [0], [1], [0, 0, 1, 1], [], []>} : vector<16x32xbf16>, vector<32x8xbf16>, vector<16x8xf32> -> vector<16x8xf32>
    %109 = vector.shape_cast %108 : vector<16x8xf32> to vector<2x8x8xf32>
    "tpu.trace_start"() <{level = 10 : i32, message = "btd,bsd->bts"}> : () -> ()
    %cst_47 = arith.constant dense<0.000000e+00> : vector<2x8x8xf32>
    %110 = tpu.matmul %103, %106, %cst_47 {dimension_numbers = #tpu.dot_dimension_numbers<[2], [2], [1], [1], [0, 0, 0, 1, 1, 1], [0], [0]>} : vector<2x8x8xf32>, vector<2x8x8xf32>, vector<2x8x8xf32> -> vector<2x8x8xf32>
    "tpu.trace_stop"() : () -> ()
    %111 = arith.addf %110, %19 : vector<2x8x8xf32>
    %cst_48 = arith.constant dense<0xFF800000> : vector<2x8xf32>
    %112 = vector.multi_reduction <maximumf>, %111, %cst_48 [2] : vector<2x8x8xf32> to vector<2x8xf32>
    %113 = vector.shape_cast %112 : vector<2x8xf32> to vector<2x8x1xf32>
    %114 = vector.broadcast %113 : vector<2x8x1xf32> to vector<2x8x8xf32>
    %115 = arith.subf %111, %114 : vector<2x8x8xf32>
    %116 = math.exp %115 : vector<2x8x8xf32>
    %cst_49 = arith.constant dense<0.000000e+00> : vector<2x8xf32>
    %117 = vector.multi_reduction <add>, %116, %cst_49 [2] : vector<2x8x8xf32> to vector<2x8xf32>
    %118 = vector.shape_cast %117 : vector<2x8xf32> to vector<2x8x1xf32>
    %119 = tpu.reciprocal %118 {approx = true} : vector<2x8x1xf32> -> vector<2x8x1xf32>
    %120 = vector.broadcast %119 : vector<2x8x1xf32> to vector<2x8x8xf32>
    %121 = arith.mulf %116, %120 : vector<2x8x8xf32>
    "tpu.trace_start"() <{level = 10 : i32, message = "bts,bsd->btd"}> : () -> ()
    %cst_50 = arith.constant dense<0.000000e+00> : vector<2x8x8xf32>
    %122 = tpu.matmul %121, %109, %cst_50 {dimension_numbers = #tpu.dot_dimension_numbers<[2], [1], [1], [2], [0, 0, 0, 1, 1, 2], [0], [0]>} : vector<2x8x8xf32>, vector<2x8x8xf32>, vector<2x8x8xf32> -> vector<2x8x8xf32>
    "tpu.trace_stop"() : () -> ()
    %123 = vector.shape_cast %122 : vector<2x8x8xf32> to vector<16x8xf32>
    %124 = arith.truncf %123 : vector<16x8xf32> to vector<16x8xbf16>
    %c144 = arith.constant 144 : index
    %c96_51 = arith.constant 96 : index
    %125 = vector.load %arg1[%c144, %c96_51] : memref<544x128xbf16, #tpu.memory_space<vmem>>, vector<8x32xbf16>
    %cst_52 = arith.constant dense<0.000000e+00> : vector<16x32xf32>
    %126 = tpu.matmul %124, %125, %cst_52 {dimension_numbers = #tpu.dot_dimension_numbers<[1], [0], [0], [1], [0, 0, 1, 1], [], []>} : vector<16x8xbf16>, vector<8x32xbf16>, vector<16x32xf32> -> vector<16x32xf32>
    %127 = arith.addf %100, %126 : vector<16x32xf32>
    %c128_53 = arith.constant 128 : index
    %c24 = arith.constant 24 : index
    %128 = vector.load %arg1[%c128_53, %c24] : memref<544x128xbf16, #tpu.memory_space<vmem>>, vector<32x8xbf16>
    %cst_54 = arith.constant dense<0.000000e+00> : vector<16x8xf32>
    %129 = tpu.matmul %45, %128, %cst_54 {dimension_numbers = #tpu.dot_dimension_numbers<[1], [0], [0], [1], [0, 0, 1, 1], [], []>} : vector<16x32xbf16>, vector<32x8xbf16>, vector<16x8xf32> -> vector<16x8xf32>
    %130 = vector.shape_cast %129 : vector<16x8xf32> to vector<2x8x8xf32>
    %c128_55 = arith.constant 128 : index
    %c56 = arith.constant 56 : index
    %131 = vector.load %arg1[%c128_55, %c56] : memref<544x128xbf16, #tpu.memory_space<vmem>>, vector<32x8xbf16>
    %cst_56 = arith.constant dense<0.000000e+00> : vector<16x8xf32>
    %132 = tpu.matmul %45, %131, %cst_56 {dimension_numbers = #tpu.dot_dimension_numbers<[1], [0], [0], [1], [0, 0, 1, 1], [], []>} : vector<16x32xbf16>, vector<32x8xbf16>, vector<16x8xf32> -> vector<16x8xf32>
    %133 = vector.shape_cast %132 : vector<16x8xf32> to vector<2x8x8xf32>
    %c128_57 = arith.constant 128 : index
    %c88 = arith.constant 88 : index
    %134 = vector.load %arg1[%c128_57, %c88] : memref<544x128xbf16, #tpu.memory_space<vmem>>, vector<32x8xbf16>
    %cst_58 = arith.constant dense<0.000000e+00> : vector<16x8xf32>
    %135 = tpu.matmul %45, %134, %cst_58 {dimension_numbers = #tpu.dot_dimension_numbers<[1], [0], [0], [1], [0, 0, 1, 1], [], []>} : vector<16x32xbf16>, vector<32x8xbf16>, vector<16x8xf32> -> vector<16x8xf32>
    %136 = vector.shape_cast %135 : vector<16x8xf32> to vector<2x8x8xf32>
    "tpu.trace_start"() <{level = 10 : i32, message = "btd,bsd->bts"}> : () -> ()
    %cst_59 = arith.constant dense<0.000000e+00> : vector<2x8x8xf32>
    %137 = tpu.matmul %130, %133, %cst_59 {dimension_numbers = #tpu.dot_dimension_numbers<[2], [2], [1], [1], [0, 0, 0, 1, 1, 1], [0], [0]>} : vector<2x8x8xf32>, vector<2x8x8xf32>, vector<2x8x8xf32> -> vector<2x8x8xf32>
    "tpu.trace_stop"() : () -> ()
    %138 = arith.addf %137, %19 : vector<2x8x8xf32>
    %cst_60 = arith.constant dense<0xFF800000> : vector<2x8xf32>
    %139 = vector.multi_reduction <maximumf>, %138, %cst_60 [2] : vector<2x8x8xf32> to vector<2x8xf32>
    %140 = vector.shape_cast %139 : vector<2x8xf32> to vector<2x8x1xf32>
    %141 = vector.broadcast %140 : vector<2x8x1xf32> to vector<2x8x8xf32>
    %142 = arith.subf %138, %141 : vector<2x8x8xf32>
    %143 = math.exp %142 : vector<2x8x8xf32>
    %cst_61 = arith.constant dense<0.000000e+00> : vector<2x8xf32>
    %144 = vector.multi_reduction <add>, %143, %cst_61 [2] : vector<2x8x8xf32> to vector<2x8xf32>
    %145 = vector.shape_cast %144 : vector<2x8xf32> to vector<2x8x1xf32>
    %146 = tpu.reciprocal %145 {approx = true} : vector<2x8x1xf32> -> vector<2x8x1xf32>
    %147 = vector.broadcast %146 : vector<2x8x1xf32> to vector<2x8x8xf32>
    %148 = arith.mulf %143, %147 : vector<2x8x8xf32>
    "tpu.trace_start"() <{level = 10 : i32, message = "bts,bsd->btd"}> : () -> ()
    %cst_62 = arith.constant dense<0.000000e+00> : vector<2x8x8xf32>
    %149 = tpu.matmul %148, %136, %cst_62 {dimension_numbers = #tpu.dot_dimension_numbers<[2], [1], [1], [2], [0, 0, 0, 1, 1, 2], [0], [0]>} : vector<2x8x8xf32>, vector<2x8x8xf32>, vector<2x8x8xf32> -> vector<2x8x8xf32>
    "tpu.trace_stop"() : () -> ()
    %150 = vector.shape_cast %149 : vector<2x8x8xf32> to vector<16x8xf32>
    %151 = arith.truncf %150 : vector<16x8xf32> to vector<16x8xbf16>
    %c152 = arith.constant 152 : index
    %c96_63 = arith.constant 96 : index
    %152 = vector.load %arg1[%c152, %c96_63] : memref<544x128xbf16, #tpu.memory_space<vmem>>, vector<8x32xbf16>
    %cst_64 = arith.constant dense<0.000000e+00> : vector<16x32xf32>
    %153 = tpu.matmul %151, %152, %cst_64 {dimension_numbers = #tpu.dot_dimension_numbers<[1], [0], [0], [1], [0, 0, 1, 1], [], []>} : vector<16x8xbf16>, vector<8x32xbf16>, vector<16x32xf32> -> vector<16x32xf32>
    %154 = arith.addf %127, %153 : vector<16x32xf32>
    %155 = arith.addf %10, %154 : vector<16x32xf32>
    %156 = vector.broadcast %22 : vector<1x32xf32> to vector<16x32xf32>
    %157 = arith.addf %155, %156 : vector<16x32xf32>
    %c19 = arith.constant 19 : index
    %c0_65 = arith.constant 0 : index
    %158 = vector.load %arg2[%c19, %c0_65] : memref<40x128xf32, #tpu.memory_space<vmem>>, vector<1x32xf32>
    %c20 = arith.constant 20 : index
    %c0_66 = arith.constant 0 : index
    %159 = vector.load %arg2[%c20, %c0_66] : memref<40x128xf32, #tpu.memory_space<vmem>>, vector<1x32xf32>
    %c21 = arith.constant 21 : index
    %c0_67 = arith.constant 0 : index
    %160 = vector.load %arg2[%c21, %c0_67] : memref<40x128xf32, #tpu.memory_space<vmem>>, vector<1x32xf32>
    %c22 = arith.constant 22 : index
    %c0_68 = arith.constant 0 : index
    %161 = vector.load %arg2[%c22, %c0_68] : memref<40x128xf32, #tpu.memory_space<vmem>>, vector<1x128xf32>
    %cst_69 = arith.constant dense<0.000000e+00> : vector<16xf32>
    %162 = vector.multi_reduction <add>, %157, %cst_69 [1] : vector<16x32xf32> to vector<16xf32>
    %163 = vector.shape_cast %162 : vector<16xf32> to vector<16x1xf32>
    %cst_70 = arith.constant 3.200000e+01 : f32
    %164 = vector.broadcast %cst_70 : f32 to vector<16x1xf32>
    %165 = arith.divf %163, %164 : vector<16x1xf32>
    %166 = vector.broadcast %165 : vector<16x1xf32> to vector<16x32xf32>
    %167 = arith.subf %157, %166 : vector<16x32xf32>
    %168 = arith.mulf %167, %167 : vector<16x32xf32>
    %cst_71 = arith.constant dense<0.000000e+00> : vector<16xf32>
    %169 = vector.multi_reduction <add>, %168, %cst_71 [1] : vector<16x32xf32> to vector<16xf32>
    %170 = vector.shape_cast %169 : vector<16xf32> to vector<16x1xf32>
    %cst_72 = arith.constant 3.200000e+01 : f32
    %171 = vector.broadcast %cst_72 : f32 to vector<16x1xf32>
    %172 = arith.divf %170, %171 : vector<16x1xf32>
    %173 = vector.broadcast %165 : vector<16x1xf32> to vector<16x32xf32>
    %174 = arith.subf %157, %173 : vector<16x32xf32>
    %cst_73 = arith.constant 9.99999974E-6 : f32
    %175 = vector.broadcast %cst_73 : f32 to vector<16x1xf32>
    %176 = arith.addf %172, %175 : vector<16x1xf32>
    %177 = math.rsqrt %176 : vector<16x1xf32>
    %178 = vector.broadcast %177 : vector<16x1xf32> to vector<16x32xf32>
    %179 = arith.mulf %174, %178 : vector<16x32xf32>
    %180 = vector.broadcast %158 : vector<1x32xf32> to vector<16x32xf32>
    %181 = arith.mulf %179, %180 : vector<16x32xf32>
    %182 = vector.broadcast %159 : vector<1x32xf32> to vector<16x32xf32>
    %183 = arith.addf %181, %182 : vector<16x32xf32>
    %184 = arith.truncf %183 : vector<16x32xf32> to vector<16x32xbf16>
    %c160 = arith.constant 160 : index
    %c0_74 = arith.constant 0 : index
    %185 = vector.load %arg1[%c160, %c0_74] : memref<544x128xbf16, #tpu.memory_space<vmem>>, vector<32x128xbf16>
    %cst_75 = arith.constant dense<0.000000e+00> : vector<16x128xf32>
    %186 = tpu.matmul %184, %185, %cst_75 {dimension_numbers = #tpu.dot_dimension_numbers<[1], [0], [0], [1], [0, 0, 1, 1], [], []>} : vector<16x32xbf16>, vector<32x128xbf16>, vector<16x128xf32> -> vector<16x128xf32>
    %187 = vector.broadcast %161 : vector<1x128xf32> to vector<16x128xf32>
    %188 = arith.addf %186, %187 : vector<16x128xf32>
    %cst_76 = arith.constant 0.000000e+00 : f32
    %189 = vector.broadcast %cst_76 : f32 to vector<16x128xf32>
    %190 = arith.maximumf %188, %189 : vector<16x128xf32>
    %191 = arith.truncf %190 : vector<16x128xf32> to vector<16x128xbf16>
    %c192 = arith.constant 192 : index
    %c0_77 = arith.constant 0 : index
    %192 = vector.load %arg1[%c192, %c0_77] : memref<544x128xbf16, #tpu.memory_space<vmem>>, vector<128x32xbf16>
    %cst_78 = arith.constant dense<0.000000e+00> : vector<16x32xf32>
    %193 = tpu.matmul %191, %192, %cst_78 {dimension_numbers = #tpu.dot_dimension_numbers<[1], [0], [0], [1], [0, 0, 1, 1], [], []>} : vector<16x128xbf16>, vector<128x32xbf16>, vector<16x32xf32> -> vector<16x32xf32>
    %194 = vector.broadcast %160 : vector<1x32xf32> to vector<16x32xf32>
    %195 = arith.addf %193, %194 : vector<16x32xf32>
    %196 = arith.addf %157, %195 : vector<16x32xf32>
    %c23 = arith.constant 23 : index
    %c0_79 = arith.constant 0 : index
    %197 = vector.load %arg2[%c23, %c0_79] : memref<40x128xf32, #tpu.memory_space<vmem>>, vector<1x32xf32>
    %c24_80 = arith.constant 24 : index
    %c0_81 = arith.constant 0 : index
    %198 = vector.load %arg2[%c24_80, %c0_81] : memref<40x128xf32, #tpu.memory_space<vmem>>, vector<1x32xf32>
    %c25 = arith.constant 25 : index
    %c0_82 = arith.constant 0 : index
    %199 = vector.load %arg2[%c25, %c0_82] : memref<40x128xf32, #tpu.memory_space<vmem>>, vector<1x32xf32>
    %cst_83 = arith.constant dense<0.000000e+00> : vector<16xf32>
    %200 = vector.multi_reduction <add>, %196, %cst_83 [1] : vector<16x32xf32> to vector<16xf32>
    %201 = vector.shape_cast %200 : vector<16xf32> to vector<16x1xf32>
    %cst_84 = arith.constant 3.200000e+01 : f32
    %202 = vector.broadcast %cst_84 : f32 to vector<16x1xf32>
    %203 = arith.divf %201, %202 : vector<16x1xf32>
    %204 = vector.broadcast %203 : vector<16x1xf32> to vector<16x32xf32>
    %205 = arith.subf %196, %204 : vector<16x32xf32>
    %206 = arith.mulf %205, %205 : vector<16x32xf32>
    %cst_85 = arith.constant dense<0.000000e+00> : vector<16xf32>
    %207 = vector.multi_reduction <add>, %206, %cst_85 [1] : vector<16x32xf32> to vector<16xf32>
    %208 = vector.shape_cast %207 : vector<16xf32> to vector<16x1xf32>
    %cst_86 = arith.constant 3.200000e+01 : f32
    %209 = vector.broadcast %cst_86 : f32 to vector<16x1xf32>
    %210 = arith.divf %208, %209 : vector<16x1xf32>
    %211 = vector.broadcast %203 : vector<16x1xf32> to vector<16x32xf32>
    %212 = arith.subf %196, %211 : vector<16x32xf32>
    %cst_87 = arith.constant 9.99999974E-6 : f32
    %213 = vector.broadcast %cst_87 : f32 to vector<16x1xf32>
    %214 = arith.addf %210, %213 : vector<16x1xf32>
    %215 = math.rsqrt %214 : vector<16x1xf32>
    %216 = vector.broadcast %215 : vector<16x1xf32> to vector<16x32xf32>
    %217 = arith.mulf %212, %216 : vector<16x32xf32>
    %218 = vector.broadcast %197 : vector<1x32xf32> to vector<16x32xf32>
    %219 = arith.mulf %217, %218 : vector<16x32xf32>
    %220 = vector.broadcast %198 : vector<1x32xf32> to vector<16x32xf32>
    %221 = arith.addf %219, %220 : vector<16x32xf32>
    %222 = arith.truncf %221 : vector<16x32xf32> to vector<16x32xbf16>
    %cst_88 = arith.constant 0.000000e+00 : f32
    %223 = vector.broadcast %cst_88 : f32 to vector<16x32xf32>
    %c320 = arith.constant 320 : index
    %c0_89 = arith.constant 0 : index
    %224 = vector.load %arg1[%c320, %c0_89] : memref<544x128xbf16, #tpu.memory_space<vmem>>, vector<32x8xbf16>
    %cst_90 = arith.constant dense<0.000000e+00> : vector<16x8xf32>
    %225 = tpu.matmul %222, %224, %cst_90 {dimension_numbers = #tpu.dot_dimension_numbers<[1], [0], [0], [1], [0, 0, 1, 1], [], []>} : vector<16x32xbf16>, vector<32x8xbf16>, vector<16x8xf32> -> vector<16x8xf32>
    %226 = vector.shape_cast %225 : vector<16x8xf32> to vector<2x8x8xf32>
    %c320_91 = arith.constant 320 : index
    %c32_92 = arith.constant 32 : index
    %227 = vector.load %arg1[%c320_91, %c32_92] : memref<544x128xbf16, #tpu.memory_space<vmem>>, vector<32x8xbf16>
    %cst_93 = arith.constant dense<0.000000e+00> : vector<16x8xf32>
    %228 = tpu.matmul %222, %227, %cst_93 {dimension_numbers = #tpu.dot_dimension_numbers<[1], [0], [0], [1], [0, 0, 1, 1], [], []>} : vector<16x32xbf16>, vector<32x8xbf16>, vector<16x8xf32> -> vector<16x8xf32>
    %229 = vector.shape_cast %228 : vector<16x8xf32> to vector<2x8x8xf32>
    %c320_94 = arith.constant 320 : index
    %c64_95 = arith.constant 64 : index
    %230 = vector.load %arg1[%c320_94, %c64_95] : memref<544x128xbf16, #tpu.memory_space<vmem>>, vector<32x8xbf16>
    %cst_96 = arith.constant dense<0.000000e+00> : vector<16x8xf32>
    %231 = tpu.matmul %222, %230, %cst_96 {dimension_numbers = #tpu.dot_dimension_numbers<[1], [0], [0], [1], [0, 0, 1, 1], [], []>} : vector<16x32xbf16>, vector<32x8xbf16>, vector<16x8xf32> -> vector<16x8xf32>
    %232 = vector.shape_cast %231 : vector<16x8xf32> to vector<2x8x8xf32>
    "tpu.trace_start"() <{level = 10 : i32, message = "btd,bsd->bts"}> : () -> ()
    %cst_97 = arith.constant dense<0.000000e+00> : vector<2x8x8xf32>
    %233 = tpu.matmul %226, %229, %cst_97 {dimension_numbers = #tpu.dot_dimension_numbers<[2], [2], [1], [1], [0, 0, 0, 1, 1, 1], [0], [0]>} : vector<2x8x8xf32>, vector<2x8x8xf32>, vector<2x8x8xf32> -> vector<2x8x8xf32>
    "tpu.trace_stop"() : () -> ()
    %234 = arith.addf %233, %19 : vector<2x8x8xf32>
    %cst_98 = arith.constant dense<0xFF800000> : vector<2x8xf32>
    %235 = vector.multi_reduction <maximumf>, %234, %cst_98 [2] : vector<2x8x8xf32> to vector<2x8xf32>
    %236 = vector.shape_cast %235 : vector<2x8xf32> to vector<2x8x1xf32>
    %237 = vector.broadcast %236 : vector<2x8x1xf32> to vector<2x8x8xf32>
    %238 = arith.subf %234, %237 : vector<2x8x8xf32>
    %239 = math.exp %238 : vector<2x8x8xf32>
    %cst_99 = arith.constant dense<0.000000e+00> : vector<2x8xf32>
    %240 = vector.multi_reduction <add>, %239, %cst_99 [2] : vector<2x8x8xf32> to vector<2x8xf32>
    %241 = vector.shape_cast %240 : vector<2x8xf32> to vector<2x8x1xf32>
    %242 = tpu.reciprocal %241 {approx = true} : vector<2x8x1xf32> -> vector<2x8x1xf32>
    %243 = vector.broadcast %242 : vector<2x8x1xf32> to vector<2x8x8xf32>
    %244 = arith.mulf %239, %243 : vector<2x8x8xf32>
    "tpu.trace_start"() <{level = 10 : i32, message = "bts,bsd->btd"}> : () -> ()
    %cst_100 = arith.constant dense<0.000000e+00> : vector<2x8x8xf32>
    %245 = tpu.matmul %244, %232, %cst_100 {dimension_numbers = #tpu.dot_dimension_numbers<[2], [1], [1], [2], [0, 0, 0, 1, 1, 2], [0], [0]>} : vector<2x8x8xf32>, vector<2x8x8xf32>, vector<2x8x8xf32> -> vector<2x8x8xf32>
    "tpu.trace_stop"() : () -> ()
    %246 = vector.shape_cast %245 : vector<2x8x8xf32> to vector<16x8xf32>
    %247 = arith.truncf %246 : vector<16x8xf32> to vector<16x8xbf16>
    %c320_101 = arith.constant 320 : index
    %c96_102 = arith.constant 96 : index
    %248 = vector.load %arg1[%c320_101, %c96_102] : memref<544x128xbf16, #tpu.memory_space<vmem>>, vector<8x32xbf16>
    %cst_103 = arith.constant dense<0.000000e+00> : vector<16x32xf32>
    %249 = tpu.matmul %247, %248, %cst_103 {dimension_numbers = #tpu.dot_dimension_numbers<[1], [0], [0], [1], [0, 0, 1, 1], [], []>} : vector<16x8xbf16>, vector<8x32xbf16>, vector<16x32xf32> -> vector<16x32xf32>
    %250 = arith.addf %223, %249 : vector<16x32xf32>
    %c320_104 = arith.constant 320 : index
    %c8_105 = arith.constant 8 : index
    %251 = vector.load %arg1[%c320_104, %c8_105] : memref<544x128xbf16, #tpu.memory_space<vmem>>, vector<32x8xbf16>
    %cst_106 = arith.constant dense<0.000000e+00> : vector<16x8xf32>
    %252 = tpu.matmul %222, %251, %cst_106 {dimension_numbers = #tpu.dot_dimension_numbers<[1], [0], [0], [1], [0, 0, 1, 1], [], []>} : vector<16x32xbf16>, vector<32x8xbf16>, vector<16x8xf32> -> vector<16x8xf32>
    %253 = vector.shape_cast %252 : vector<16x8xf32> to vector<2x8x8xf32>
    %c320_107 = arith.constant 320 : index
    %c40_108 = arith.constant 40 : index
    %254 = vector.load %arg1[%c320_107, %c40_108] : memref<544x128xbf16, #tpu.memory_space<vmem>>, vector<32x8xbf16>
    %cst_109 = arith.constant dense<0.000000e+00> : vector<16x8xf32>
    %255 = tpu.matmul %222, %254, %cst_109 {dimension_numbers = #tpu.dot_dimension_numbers<[1], [0], [0], [1], [0, 0, 1, 1], [], []>} : vector<16x32xbf16>, vector<32x8xbf16>, vector<16x8xf32> -> vector<16x8xf32>
    %256 = vector.shape_cast %255 : vector<16x8xf32> to vector<2x8x8xf32>
    %c320_110 = arith.constant 320 : index
    %c72_111 = arith.constant 72 : index
    %257 = vector.load %arg1[%c320_110, %c72_111] : memref<544x128xbf16, #tpu.memory_space<vmem>>, vector<32x8xbf16>
    %cst_112 = arith.constant dense<0.000000e+00> : vector<16x8xf32>
    %258 = tpu.matmul %222, %257, %cst_112 {dimension_numbers = #tpu.dot_dimension_numbers<[1], [0], [0], [1], [0, 0, 1, 1], [], []>} : vector<16x32xbf16>, vector<32x8xbf16>, vector<16x8xf32> -> vector<16x8xf32>
    %259 = vector.shape_cast %258 : vector<16x8xf32> to vector<2x8x8xf32>
    "tpu.trace_start"() <{level = 10 : i32, message = "btd,bsd->bts"}> : () -> ()
    %cst_113 = arith.constant dense<0.000000e+00> : vector<2x8x8xf32>
    %260 = tpu.matmul %253, %256, %cst_113 {dimension_numbers = #tpu.dot_dimension_numbers<[2], [2], [1], [1], [0, 0, 0, 1, 1, 1], [0], [0]>} : vector<2x8x8xf32>, vector<2x8x8xf32>, vector<2x8x8xf32> -> vector<2x8x8xf32>
    "tpu.trace_stop"() : () -> ()
    %261 = arith.addf %260, %19 : vector<2x8x8xf32>
    %cst_114 = arith.constant dense<0xFF800000> : vector<2x8xf32>
    %262 = vector.multi_reduction <maximumf>, %261, %cst_114 [2] : vector<2x8x8xf32> to vector<2x8xf32>
    %263 = vector.shape_cast %262 : vector<2x8xf32> to vector<2x8x1xf32>
    %264 = vector.broadcast %263 : vector<2x8x1xf32> to vector<2x8x8xf32>
    %265 = arith.subf %261, %264 : vector<2x8x8xf32>
    %266 = math.exp %265 : vector<2x8x8xf32>
    %cst_115 = arith.constant dense<0.000000e+00> : vector<2x8xf32>
    %267 = vector.multi_reduction <add>, %266, %cst_115 [2] : vector<2x8x8xf32> to vector<2x8xf32>
    %268 = vector.shape_cast %267 : vector<2x8xf32> to vector<2x8x1xf32>
    %269 = tpu.reciprocal %268 {approx = true} : vector<2x8x1xf32> -> vector<2x8x1xf32>
    %270 = vector.broadcast %269 : vector<2x8x1xf32> to vector<2x8x8xf32>
    %271 = arith.mulf %266, %270 : vector<2x8x8xf32>
    "tpu.trace_start"() <{level = 10 : i32, message = "bts,bsd->btd"}> : () -> ()
    %cst_116 = arith.constant dense<0.000000e+00> : vector<2x8x8xf32>
    %272 = tpu.matmul %271, %259, %cst_116 {dimension_numbers = #tpu.dot_dimension_numbers<[2], [1], [1], [2], [0, 0, 0, 1, 1, 2], [0], [0]>} : vector<2x8x8xf32>, vector<2x8x8xf32>, vector<2x8x8xf32> -> vector<2x8x8xf32>
    "tpu.trace_stop"() : () -> ()
    %273 = vector.shape_cast %272 : vector<2x8x8xf32> to vector<16x8xf32>
    %274 = arith.truncf %273 : vector<16x8xf32> to vector<16x8xbf16>
    %c328 = arith.constant 328 : index
    %c96_117 = arith.constant 96 : index
    %275 = vector.load %arg1[%c328, %c96_117] : memref<544x128xbf16, #tpu.memory_space<vmem>>, vector<8x32xbf16>
    %cst_118 = arith.constant dense<0.000000e+00> : vector<16x32xf32>
    %276 = tpu.matmul %274, %275, %cst_118 {dimension_numbers = #tpu.dot_dimension_numbers<[1], [0], [0], [1], [0, 0, 1, 1], [], []>} : vector<16x8xbf16>, vector<8x32xbf16>, vector<16x32xf32> -> vector<16x32xf32>
    %277 = arith.addf %250, %276 : vector<16x32xf32>
    %c320_119 = arith.constant 320 : index
    %c16_120 = arith.constant 16 : index
    %278 = vector.load %arg1[%c320_119, %c16_120] : memref<544x128xbf16, #tpu.memory_space<vmem>>, vector<32x8xbf16>
    %cst_121 = arith.constant dense<0.000000e+00> : vector<16x8xf32>
    %279 = tpu.matmul %222, %278, %cst_121 {dimension_numbers = #tpu.dot_dimension_numbers<[1], [0], [0], [1], [0, 0, 1, 1], [], []>} : vector<16x32xbf16>, vector<32x8xbf16>, vector<16x8xf32> -> vector<16x8xf32>
    %280 = vector.shape_cast %279 : vector<16x8xf32> to vector<2x8x8xf32>
    %c320_122 = arith.constant 320 : index
    %c48_123 = arith.constant 48 : index
    %281 = vector.load %arg1[%c320_122, %c48_123] : memref<544x128xbf16, #tpu.memory_space<vmem>>, vector<32x8xbf16>
    %cst_124 = arith.constant dense<0.000000e+00> : vector<16x8xf32>
    %282 = tpu.matmul %222, %281, %cst_124 {dimension_numbers = #tpu.dot_dimension_numbers<[1], [0], [0], [1], [0, 0, 1, 1], [], []>} : vector<16x32xbf16>, vector<32x8xbf16>, vector<16x8xf32> -> vector<16x8xf32>
    %283 = vector.shape_cast %282 : vector<16x8xf32> to vector<2x8x8xf32>
    %c320_125 = arith.constant 320 : index
    %c80_126 = arith.constant 80 : index
    %284 = vector.load %arg1[%c320_125, %c80_126] : memref<544x128xbf16, #tpu.memory_space<vmem>>, vector<32x8xbf16>
    %cst_127 = arith.constant dense<0.000000e+00> : vector<16x8xf32>
    %285 = tpu.matmul %222, %284, %cst_127 {dimension_numbers = #tpu.dot_dimension_numbers<[1], [0], [0], [1], [0, 0, 1, 1], [], []>} : vector<16x32xbf16>, vector<32x8xbf16>, vector<16x8xf32> -> vector<16x8xf32>
    %286 = vector.shape_cast %285 : vector<16x8xf32> to vector<2x8x8xf32>
    "tpu.trace_start"() <{level = 10 : i32, message = "btd,bsd->bts"}> : () -> ()
    %cst_128 = arith.constant dense<0.000000e+00> : vector<2x8x8xf32>
    %287 = tpu.matmul %280, %283, %cst_128 {dimension_numbers = #tpu.dot_dimension_numbers<[2], [2], [1], [1], [0, 0, 0, 1, 1, 1], [0], [0]>} : vector<2x8x8xf32>, vector<2x8x8xf32>, vector<2x8x8xf32> -> vector<2x8x8xf32>
    "tpu.trace_stop"() : () -> ()
    %288 = arith.addf %287, %19 : vector<2x8x8xf32>
    %cst_129 = arith.constant dense<0xFF800000> : vector<2x8xf32>
    %289 = vector.multi_reduction <maximumf>, %288, %cst_129 [2] : vector<2x8x8xf32> to vector<2x8xf32>
    %290 = vector.shape_cast %289 : vector<2x8xf32> to vector<2x8x1xf32>
    %291 = vector.broadcast %290 : vector<2x8x1xf32> to vector<2x8x8xf32>
    %292 = arith.subf %288, %291 : vector<2x8x8xf32>
    %293 = math.exp %292 : vector<2x8x8xf32>
    %cst_130 = arith.constant dense<0.000000e+00> : vector<2x8xf32>
    %294 = vector.multi_reduction <add>, %293, %cst_130 [2] : vector<2x8x8xf32> to vector<2x8xf32>
    %295 = vector.shape_cast %294 : vector<2x8xf32> to vector<2x8x1xf32>
    %296 = tpu.reciprocal %295 {approx = true} : vector<2x8x1xf32> -> vector<2x8x1xf32>
    %297 = vector.broadcast %296 : vector<2x8x1xf32> to vector<2x8x8xf32>
    %298 = arith.mulf %293, %297 : vector<2x8x8xf32>
    "tpu.trace_start"() <{level = 10 : i32, message = "bts,bsd->btd"}> : () -> ()
    %cst_131 = arith.constant dense<0.000000e+00> : vector<2x8x8xf32>
    %299 = tpu.matmul %298, %286, %cst_131 {dimension_numbers = #tpu.dot_dimension_numbers<[2], [1], [1], [2], [0, 0, 0, 1, 1, 2], [0], [0]>} : vector<2x8x8xf32>, vector<2x8x8xf32>, vector<2x8x8xf32> -> vector<2x8x8xf32>
    "tpu.trace_stop"() : () -> ()
    %300 = vector.shape_cast %299 : vector<2x8x8xf32> to vector<16x8xf32>
    %301 = arith.truncf %300 : vector<16x8xf32> to vector<16x8xbf16>
    %c336 = arith.constant 336 : index
    %c96_132 = arith.constant 96 : index
    %302 = vector.load %arg1[%c336, %c96_132] : memref<544x128xbf16, #tpu.memory_space<vmem>>, vector<8x32xbf16>
    %cst_133 = arith.constant dense<0.000000e+00> : vector<16x32xf32>
    %303 = tpu.matmul %301, %302, %cst_133 {dimension_numbers = #tpu.dot_dimension_numbers<[1], [0], [0], [1], [0, 0, 1, 1], [], []>} : vector<16x8xbf16>, vector<8x32xbf16>, vector<16x32xf32> -> vector<16x32xf32>
    %304 = arith.addf %277, %303 : vector<16x32xf32>
    %c320_134 = arith.constant 320 : index
    %c24_135 = arith.constant 24 : index
    %305 = vector.load %arg1[%c320_134, %c24_135] : memref<544x128xbf16, #tpu.memory_space<vmem>>, vector<32x8xbf16>
    %cst_136 = arith.constant dense<0.000000e+00> : vector<16x8xf32>
    %306 = tpu.matmul %222, %305, %cst_136 {dimension_numbers = #tpu.dot_dimension_numbers<[1], [0], [0], [1], [0, 0, 1, 1], [], []>} : vector<16x32xbf16>, vector<32x8xbf16>, vector<16x8xf32> -> vector<16x8xf32>
    %307 = vector.shape_cast %306 : vector<16x8xf32> to vector<2x8x8xf32>
    %c320_137 = arith.constant 320 : index
    %c56_138 = arith.constant 56 : index
    %308 = vector.load %arg1[%c320_137, %c56_138] : memref<544x128xbf16, #tpu.memory_space<vmem>>, vector<32x8xbf16>
    %cst_139 = arith.constant dense<0.000000e+00> : vector<16x8xf32>
    %309 = tpu.matmul %222, %308, %cst_139 {dimension_numbers = #tpu.dot_dimension_numbers<[1], [0], [0], [1], [0, 0, 1, 1], [], []>} : vector<16x32xbf16>, vector<32x8xbf16>, vector<16x8xf32> -> vector<16x8xf32>
    %310 = vector.shape_cast %309 : vector<16x8xf32> to vector<2x8x8xf32>
    %c320_140 = arith.constant 320 : index
    %c88_141 = arith.constant 88 : index
    %311 = vector.load %arg1[%c320_140, %c88_141] : memref<544x128xbf16, #tpu.memory_space<vmem>>, vector<32x8xbf16>
    %cst_142 = arith.constant dense<0.000000e+00> : vector<16x8xf32>
    %312 = tpu.matmul %222, %311, %cst_142 {dimension_numbers = #tpu.dot_dimension_numbers<[1], [0], [0], [1], [0, 0, 1, 1], [], []>} : vector<16x32xbf16>, vector<32x8xbf16>, vector<16x8xf32> -> vector<16x8xf32>
    %313 = vector.shape_cast %312 : vector<16x8xf32> to vector<2x8x8xf32>
    "tpu.trace_start"() <{level = 10 : i32, message = "btd,bsd->bts"}> : () -> ()
    %cst_143 = arith.constant dense<0.000000e+00> : vector<2x8x8xf32>
    %314 = tpu.matmul %307, %310, %cst_143 {dimension_numbers = #tpu.dot_dimension_numbers<[2], [2], [1], [1], [0, 0, 0, 1, 1, 1], [0], [0]>} : vector<2x8x8xf32>, vector<2x8x8xf32>, vector<2x8x8xf32> -> vector<2x8x8xf32>
    "tpu.trace_stop"() : () -> ()
    %315 = arith.addf %314, %19 : vector<2x8x8xf32>
    %cst_144 = arith.constant dense<0xFF800000> : vector<2x8xf32>
    %316 = vector.multi_reduction <maximumf>, %315, %cst_144 [2] : vector<2x8x8xf32> to vector<2x8xf32>
    %317 = vector.shape_cast %316 : vector<2x8xf32> to vector<2x8x1xf32>
    %318 = vector.broadcast %317 : vector<2x8x1xf32> to vector<2x8x8xf32>
    %319 = arith.subf %315, %318 : vector<2x8x8xf32>
    %320 = math.exp %319 : vector<2x8x8xf32>
    %cst_145 = arith.constant dense<0.000000e+00> : vector<2x8xf32>
    %321 = vector.multi_reduction <add>, %320, %cst_145 [2] : vector<2x8x8xf32> to vector<2x8xf32>
    %322 = vector.shape_cast %321 : vector<2x8xf32> to vector<2x8x1xf32>
    %323 = tpu.reciprocal %322 {approx = true} : vector<2x8x1xf32> -> vector<2x8x1xf32>
    %324 = vector.broadcast %323 : vector<2x8x1xf32> to vector<2x8x8xf32>
    %325 = arith.mulf %320, %324 : vector<2x8x8xf32>
    "tpu.trace_start"() <{level = 10 : i32, message = "bts,bsd->btd"}> : () -> ()
    %cst_146 = arith.constant dense<0.000000e+00> : vector<2x8x8xf32>
    %326 = tpu.matmul %325, %313, %cst_146 {dimension_numbers = #tpu.dot_dimension_numbers<[2], [1], [1], [2], [0, 0, 0, 1, 1, 2], [0], [0]>} : vector<2x8x8xf32>, vector<2x8x8xf32>, vector<2x8x8xf32> -> vector<2x8x8xf32>
    "tpu.trace_stop"() : () -> ()
    %327 = vector.shape_cast %326 : vector<2x8x8xf32> to vector<16x8xf32>
    %328 = arith.truncf %327 : vector<16x8xf32> to vector<16x8xbf16>
    %c344 = arith.constant 344 : index
    %c96_147 = arith.constant 96 : index
    %329 = vector.load %arg1[%c344, %c96_147] : memref<544x128xbf16, #tpu.memory_space<vmem>>, vector<8x32xbf16>
    %cst_148 = arith.constant dense<0.000000e+00> : vector<16x32xf32>
    %330 = tpu.matmul %328, %329, %cst_148 {dimension_numbers = #tpu.dot_dimension_numbers<[1], [0], [0], [1], [0, 0, 1, 1], [], []>} : vector<16x8xbf16>, vector<8x32xbf16>, vector<16x32xf32> -> vector<16x32xf32>
    %331 = arith.addf %304, %330 : vector<16x32xf32>
    %332 = arith.addf %196, %331 : vector<16x32xf32>
    %333 = vector.broadcast %199 : vector<1x32xf32> to vector<16x32xf32>
    %334 = arith.addf %332, %333 : vector<16x32xf32>
    %c26 = arith.constant 26 : index
    %c0_149 = arith.constant 0 : index
    %335 = vector.load %arg2[%c26, %c0_149] : memref<40x128xf32, #tpu.memory_space<vmem>>, vector<1x32xf32>
    %c27 = arith.constant 27 : index
    %c0_150 = arith.constant 0 : index
    %336 = vector.load %arg2[%c27, %c0_150] : memref<40x128xf32, #tpu.memory_space<vmem>>, vector<1x32xf32>
    %c28 = arith.constant 28 : index
    %c0_151 = arith.constant 0 : index
    %337 = vector.load %arg2[%c28, %c0_151] : memref<40x128xf32, #tpu.memory_space<vmem>>, vector<1x32xf32>
    %c29 = arith.constant 29 : index
    %c0_152 = arith.constant 0 : index
    %338 = vector.load %arg2[%c29, %c0_152] : memref<40x128xf32, #tpu.memory_space<vmem>>, vector<1x128xf32>
    %cst_153 = arith.constant dense<0.000000e+00> : vector<16xf32>
    %339 = vector.multi_reduction <add>, %334, %cst_153 [1] : vector<16x32xf32> to vector<16xf32>
    %340 = vector.shape_cast %339 : vector<16xf32> to vector<16x1xf32>
    %cst_154 = arith.constant 3.200000e+01 : f32
    %341 = vector.broadcast %cst_154 : f32 to vector<16x1xf32>
    %342 = arith.divf %340, %341 : vector<16x1xf32>
    %343 = vector.broadcast %342 : vector<16x1xf32> to vector<16x32xf32>
    %344 = arith.subf %334, %343 : vector<16x32xf32>
    %345 = arith.mulf %344, %344 : vector<16x32xf32>
    %cst_155 = arith.constant dense<0.000000e+00> : vector<16xf32>
    %346 = vector.multi_reduction <add>, %345, %cst_155 [1] : vector<16x32xf32> to vector<16xf32>
    %347 = vector.shape_cast %346 : vector<16xf32> to vector<16x1xf32>
    %cst_156 = arith.constant 3.200000e+01 : f32
    %348 = vector.broadcast %cst_156 : f32 to vector<16x1xf32>
    %349 = arith.divf %347, %348 : vector<16x1xf32>
    %350 = vector.broadcast %342 : vector<16x1xf32> to vector<16x32xf32>
    %351 = arith.subf %334, %350 : vector<16x32xf32>
    %cst_157 = arith.constant 9.99999974E-6 : f32
    %352 = vector.broadcast %cst_157 : f32 to vector<16x1xf32>
    %353 = arith.addf %349, %352 : vector<16x1xf32>
    %354 = math.rsqrt %353 : vector<16x1xf32>
    %355 = vector.broadcast %354 : vector<16x1xf32> to vector<16x32xf32>
    %356 = arith.mulf %351, %355 : vector<16x32xf32>
    %357 = vector.broadcast %335 : vector<1x32xf32> to vector<16x32xf32>
    %358 = arith.mulf %356, %357 : vector<16x32xf32>
    %359 = vector.broadcast %336 : vector<1x32xf32> to vector<16x32xf32>
    %360 = arith.addf %358, %359 : vector<16x32xf32>
    %361 = arith.truncf %360 : vector<16x32xf32> to vector<16x32xbf16>
    %c352 = arith.constant 352 : index
    %c0_158 = arith.constant 0 : index
    %362 = vector.load %arg1[%c352, %c0_158] : memref<544x128xbf16, #tpu.memory_space<vmem>>, vector<32x128xbf16>
    %cst_159 = arith.constant dense<0.000000e+00> : vector<16x128xf32>
    %363 = tpu.matmul %361, %362, %cst_159 {dimension_numbers = #tpu.dot_dimension_numbers<[1], [0], [0], [1], [0, 0, 1, 1], [], []>} : vector<16x32xbf16>, vector<32x128xbf16>, vector<16x128xf32> -> vector<16x128xf32>
    %364 = vector.broadcast %338 : vector<1x128xf32> to vector<16x128xf32>
    %365 = arith.addf %363, %364 : vector<16x128xf32>
    %cst_160 = arith.constant 0.000000e+00 : f32
    %366 = vector.broadcast %cst_160 : f32 to vector<16x128xf32>
    %367 = arith.maximumf %365, %366 : vector<16x128xf32>
    %368 = arith.truncf %367 : vector<16x128xf32> to vector<16x128xbf16>
    %c384 = arith.constant 384 : index
    %c0_161 = arith.constant 0 : index
    %369 = vector.load %arg1[%c384, %c0_161] : memref<544x128xbf16, #tpu.memory_space<vmem>>, vector<128x32xbf16>
    %cst_162 = arith.constant dense<0.000000e+00> : vector<16x32xf32>
    %370 = tpu.matmul %368, %369, %cst_162 {dimension_numbers = #tpu.dot_dimension_numbers<[1], [0], [0], [1], [0, 0, 1, 1], [], []>} : vector<16x128xbf16>, vector<128x32xbf16>, vector<16x32xf32> -> vector<16x32xf32>
    %371 = vector.broadcast %337 : vector<1x32xf32> to vector<16x32xf32>
    %372 = arith.addf %370, %371 : vector<16x32xf32>
    %373 = arith.addf %334, %372 : vector<16x32xf32>
    %c30 = arith.constant 30 : index
    %c0_163 = arith.constant 0 : index
    %374 = vector.load %arg2[%c30, %c0_163] : memref<40x128xf32, #tpu.memory_space<vmem>>, vector<1x32xf32>
    %c31 = arith.constant 31 : index
    %c0_164 = arith.constant 0 : index
    %375 = vector.load %arg2[%c31, %c0_164] : memref<40x128xf32, #tpu.memory_space<vmem>>, vector<1x32xf32>
    %cst_165 = arith.constant dense<0.000000e+00> : vector<16xf32>
    %376 = vector.multi_reduction <add>, %373, %cst_165 [1] : vector<16x32xf32> to vector<16xf32>
    %377 = vector.shape_cast %376 : vector<16xf32> to vector<16x1xf32>
    %cst_166 = arith.constant 3.200000e+01 : f32
    %378 = vector.broadcast %cst_166 : f32 to vector<16x1xf32>
    %379 = arith.divf %377, %378 : vector<16x1xf32>
    %380 = vector.broadcast %379 : vector<16x1xf32> to vector<16x32xf32>
    %381 = arith.subf %373, %380 : vector<16x32xf32>
    %382 = arith.mulf %381, %381 : vector<16x32xf32>
    %cst_167 = arith.constant dense<0.000000e+00> : vector<16xf32>
    %383 = vector.multi_reduction <add>, %382, %cst_167 [1] : vector<16x32xf32> to vector<16xf32>
    %384 = vector.shape_cast %383 : vector<16xf32> to vector<16x1xf32>
    %cst_168 = arith.constant 3.200000e+01 : f32
    %385 = vector.broadcast %cst_168 : f32 to vector<16x1xf32>
    %386 = arith.divf %384, %385 : vector<16x1xf32>
    %387 = vector.broadcast %379 : vector<16x1xf32> to vector<16x32xf32>
    %388 = arith.subf %373, %387 : vector<16x32xf32>
    %cst_169 = arith.constant 9.99999974E-6 : f32
    %389 = vector.broadcast %cst_169 : f32 to vector<16x1xf32>
    %390 = arith.addf %386, %389 : vector<16x1xf32>
    %391 = math.rsqrt %390 : vector<16x1xf32>
    %392 = vector.broadcast %391 : vector<16x1xf32> to vector<16x32xf32>
    %393 = arith.mulf %388, %392 : vector<16x32xf32>
    %394 = vector.broadcast %374 : vector<1x32xf32> to vector<16x32xf32>
    %395 = arith.mulf %393, %394 : vector<16x32xf32>
    %396 = vector.broadcast %375 : vector<1x32xf32> to vector<16x32xf32>
    %397 = arith.addf %395, %396 : vector<16x32xf32>
    %398 = arith.truncf %397 : vector<16x32xf32> to vector<16x32xbf16>
    %c512 = arith.constant 512 : index
    %c0_170 = arith.constant 0 : index
    %399 = vector.load %arg1[%c512, %c0_170] : memref<544x128xbf16, #tpu.memory_space<vmem>>, vector<32x128xbf16>
    %cst_171 = arith.constant dense<0.000000e+00> : vector<16x128xf32>
    %400 = tpu.matmul %398, %399, %cst_171 {dimension_numbers = #tpu.dot_dimension_numbers<[1], [0], [0], [1], [0, 0, 1, 1], [], []>} : vector<16x32xbf16>, vector<32x128xbf16>, vector<16x128xf32> -> vector<16x128xf32>
    %c32_172 = arith.constant 32 : index
    %c0_173 = arith.constant 0 : index
    %401 = vector.load %arg2[%c32_172, %c0_173] : memref<40x128xf32, #tpu.memory_space<vmem>>, vector<1x128xf32>
    %402 = vector.broadcast %401 : vector<1x128xf32> to vector<16x128xf32>
    %403 = arith.addf %400, %402 : vector<16x128xf32>
    %c0_174 = arith.constant 0 : index
    %c0_175 = arith.constant 0 : index
    %404 = vector.load %arg3[%c0_174, %c0_175] : memref<16x128xf32, #tpu.memory_space<vmem>>, vector<16x128xf32>
    tpu.vector_store %arg3[%c0_174, %c0_175], %403 {strides = array<i32>} : memref<16x128xf32, #tpu.memory_space<vmem>>, vector<16x128xf32>,
    return
  }
}

</mosaic_0001>

<bundles_post_ra>
// kernel: drakegpt_forward.1
= control target key start
LH: loop header
LB: loop body
LE: loop exit
PB: predicated region body
PF: predicated region fallthrough
CT: control target
= control target key end

     0   :  { %8 = vsyncpa [#allocation3], 0  ;;  %s3390_s0 = inlined_call_operand.vmem [shape: s32[16,1], index: 0, kind: input, shape index: {}]   ;;  %s3391_s1 = inlined_call_operand.hbm [shape: bf16[544,128], index: 1, kind: input, shape index: {}]   ;;  %s3392_s2 = inlined_call_operand.hbm [shape: f32[40,128], index: 2, kind: input, shape index: {}]   ;;  %s3393_s3 = inlined_call_operand.vmem [shape: f32[16,128], index: 3, kind: output, shape index: {}]  }
   0x1   :  { %s16_s14 = sshll.u32 %s3391_s1, 4  ;;  %s17_s14 = int_to_ptr.hbm [resolvable:$true] %s16_s14 }
   0x2   :  { %9 = vsyncpa [#allocation5], 0  ;;  %s2980_s15 = smov [#allocation2]   ;;  %s29_s19 = sshll.u32 %s3392_s2, 4  ;;  %s30_s19 = int_to_ptr.hbm [resolvable:$true] %s29_s19 }
   0x3   :  { %s18_s16 = sshll.u32 %s2980_s15, 4  ;;  %s2981_s20 = smov 64   ;;  %s19_s16 = int_to_ptr.vmem [resolvable:$true] %s18_s16 }
   0x4   :  { %s2982_s21 = smov 4   ;;  %s2983_s22 = smov [#allocation4]  }
   0x5   :  { %24 = dma.hbm_to_vmem [thread:$0]  %s17_s14, 4352, %s19_s16, [#allocation3], %s2981_s20, %s2981_s20, %s2982_s21  }
   0x6   :  { %s31_s23 = sshll.u32 %s2983_s22, 4  ;;  %s2984_s24 = smov 128   ;;  %s32_s23 = int_to_ptr.vmem [resolvable:$true] %s31_s23 }
   0x7   :  { %s2985_s1 = smov 8  }
   0x8   :  { %37 = dma.hbm_to_vmem [thread:$0]  %s30_s19, 640, %s32_s23, [#allocation5], %s2984_s24, %s2984_s24, %s2985_s1  }
   0x9   :  { %2976 = dma.done.wait [#allocation3], 4352  }
   0xa   :  { %2977 = vsyncadd [#allocation3], 4294962944 }
   0xb   :  { %2978 = dma.done.wait [#allocation5], 640  }
   0xc   :  { %2979 = vsyncadd [#allocation5], 4294966656  ;;  %v2986_v0 = vmov 0   ;;  %v47_v1 = vld [vmem:[%s3390_s0] sm:$0xff]  ;;  %v2756_v2 = vld [vmem:[#allocation2 + $0x38] sm:$0xff]  ;;  %v49_v12 = vlaneseq  ;;  %vm151_vm3 = vcmask 261120  }
   0xd   :  { %2824 = vset.pattern.permute.xlu0 %v2986_v0  ;;  %130 = vmatpush.bf16.msra.mxu0 %v2756_v2  ;;  %v2755_v3 = vld [vmem:[#allocation2 + $0x30] sm:$0xff]  ;;  %v48_v4 = vld [vmem:[%s3390_s0 + $0x8] sm:$0xff]  ;;  %v2753_v6 = vld [vmem:[#allocation2 + $0x20] sm:$0xff]  ;;  %v2987_v15 = vmov 1.0|1.0   ;;  %v2988_v24 = vmov 32.0  }
   0xe   :  { %52 = vperm.xlu0 %2824, %v47_v1   ;;  %v2754_v5 = vld [vmem:[#allocation2 + $0x28] sm:$0xff]  ;;  %v2752_v7 = vld [vmem:[#allocation2 + $0x18] sm:$0xff]  ;;  %v2751_v8 = vld [vmem:[#allocation2 + $0x10] sm:$0xff]  ;;  %v3036_v13 = vand.u32 127, %v49_v12  ;;  %2842 = vrcp.f32 %v2988_v24  ;;  %s2989_s0 = smov 96   ;;  %s2990_s28 = smov 88  }
   0xf   :  { %v2750_v9 = vld [vmem:[#allocation2 + $0x8] sm:$0xff]  ;;  %v2749_v10 = vld [vmem:[#allocation2] sm:$0xff]  ;;  %v80_v16 = vld [vmem:[#allocation4] sm:$0xff]  ;;  %s2991_s29 = smov 120   ;;  %vm283_vm11 = vcmask 64512   ;;  %s2993_s30 = smov 56  }
  0x10   :  { %v81_v20 = vld [vmem:[#allocation4 + $0x8] sm:$0xff]  ;;  %v2758_v27 = vld [vmem:[#allocation2 + $0x48] sm:$0xff]  ;;  %v2757_v28 = vld [vmem:[#allocation2 + $0x40] sm:$0xff]  ;;  %s2994_s4 = smov 32   ;;  %vm609_vm13 = vcmask 1043456   ;;  %s2995_s5 = smov 80  }
  0x11   :  { %131 = vmatpush.bf16.msra.mxu0 %v2755_v3  ;;  %235 = vmatpush.bf16.msra.mxu1 %v2758_v27  ;;  %v3061_v49 = vld [vmem:[#allocation2 + $0x48] sm:$0xff]  ;;  %v3068_v63 = vld [vmem:[#allocation2 + $0x40] sm:$0xff]   ;;  %s2996_s6 = smov 112   ;;  %s2997_s7 = smov 48  }
  0x12   :  { %v2825_v3 = vld [vmem:[#allocation4 + $0x10] ss:$0 sm:$0xff]  ;;  %s2998_s8 = smov 72   ;;  %s2999_s9 = smov 104  }
  0x13   :  { %s3000_s10 = smov 40  }
  0x14   :  { %v2843_v25 = vpop.eup %2842 }
  0x15   :  { %132 = vmatpush.bf16.msra.mxu0 %v2754_v5  ;;  %v159_v26 = vmul.f32 32.0, %v2843_v25  ;;  %236 = vmatpush.bf16.msra.mxu1 %v2757_v28  ;;  %vm163_vm4 = vweird.f32 %v2843_v25 }
  0x16   :  { %55 = vperm.xlu0 %2824, %v48_v4  }
  0x17   :  { %v160_v29 = vsub.f32 1.0, %v159_v26 }
  0x19   :  { %133 = vmatpush.bf16.msra.mxu0 %v2753_v6  ;;  %v161_v30 = vmul.f32 %v2843_v25, %v160_v29  ;;  %v2992_v29 = vmov -1e+30  }
  0x1b   :  { %v162_v31 = vadd.f32 %v2843_v25, %v161_v30 }
  0x1d   :  { %134 = vmatpush.bf16.msra.mxu0 %v2752_v7  ;;  %v3051_v32 = vsel %vm163_vm4, %v2843_v25, %v162_v31  ;;  %v2826_v7 = vld [vmem:[#allocation4 + $0x11] ss:$0 sm:$0xff] }
  0x1e   :  { %245 = vrot.lane.b32.xlu0 %v2758_v27, %s2989_s0 }
  0x21   :  { %135 = vmatpush.bf16.msra.mxu0 %v2751_v8 }
  0x25   :  { %136 = vmatpush.bf16.msra.mxu0 %v2750_v9 }
  0x26   :  { %263 = vrot.lane.b32.xlu0 %v2757_v28, %s2981_s20 }
  0x29   :  { %137 = vmatpush.bf16.msra.mxu0 %v2749_v10 }
  0x80   :  { %v53_v11 = vpop.permute.xlu0 %52 }
  0x81   :  { %vm57_vm0 = vcmp.eq.s32.totalorder %v53_v11, %v3036_v13 }
  0x88   :  { %v56_v14 = vpop.permute.xlu0 %55 }
  0x89   :  { %vm58_vm1 = vcmp.eq.s32.totalorder %v56_v14, %v3036_v13 }
  0x8a   :  { %vm2520_vm2 = vmpackc.low %vm58_vm1, %vm57_vm0 }
  0x8b   :  { %2521 = vmatmul.msk.bf16.vlgmr.msra.gmra.mxu0 %vm2520_vm2, %v2987_v15 }
  0x90   :  { %v246_v43 = vpop.permute.xlu0 %245 }
  0x91   :  { %255 = vmatpush.bf16.msra.mxu2 %v246_v43 }
  0x98   :  { %v264_v58 = vpop.permute.xlu0 %263 }
 0x108   :  { %v139_v17 = vpop.f32.mrf.mxu0 }
 0x109   :  { %v3040_v18 = vadd.f32 %v139_v17, %v80_v16 }
 0x10b   :  { %v152_v19 = vsel %vm151_vm3, %v3040_v18, 0.0 }
 0x10c   :  { %153 = vadd.xlane.f32.xlu1 %v152_v19 }
 0x110   :  { %v141_v21 = vpop.f32.mrf.mxu0 }
 0x111   :  { %v3044_v22 = vadd.f32 %v141_v21, %v81_v20 }
 0x113   :  { %v155_v23 = vsel %vm151_vm3, %v3044_v22, 0.0 }
 0x114   :  { %156 = vadd.xlane.f32.xlu1 %v155_v23 }
 0x12d   :  { %243 = vrot.lane.b32.xlu1 %v2757_v28, %s2989_s0  ;;  %v145_v28 = vshrl.u32 %v49_v12, 7 }
 0x12f   :  { %vm146_vm12 = vcmp.ge.s32.totalorder %v145_v28, %v3036_v13 }
 0x130   :  { %v3090_v30 = vsel %vm146_vm12, 0.0, %v2992_v29 }
 0x135   :  { %441 = vrot.lane.b32.xlu1 %v3061_v49, %s2990_s28 }
 0x13d   :  { %421 = vrot.lane.b32.xlu1 %v3061_v49, %s2991_s29 }
 0x145   :  { %439 = vrot.lane.b32.xlu1 %v3068_v63, %s2990_s28 }
 0x14d   :  { %419 = vrot.lane.b32.xlu1 %v3068_v63, %s2991_s29 }
 0x17f   :  { %v154_v33 = vpop.xlane.xlu1 %153 }
 0x180   :  { %v165_v34 = vmul.f32 %v3051_v32, %v154_v33 }
 0x182   :  { %v167_v35 = vsub.f32 %v3040_v18, %v165_v34 }
 0x184   :  { %v169_v36 = vmul.f32 %v167_v35, %v167_v35 }
 0x186   :  { %v171_v37 = vsel %vm151_vm3, %v169_v36, 0.0 }
 0x187   :  { %172 = vadd.xlane.f32.xlu2 %v171_v37  ;;  %v157_v38 = vpop.xlane.xlu1 %156 }
 0x188   :  { %v166_v39 = vmul.f32 %v3051_v32, %v157_v38 }
 0x18a   :  { %v168_v40 = vsub.f32 %v3044_v22, %v166_v39 }
 0x18c   :  { %v170_v41 = vmul.f32 %v168_v40, %v168_v40 }
 0x18e   :  { %v174_v42 = vsel %vm151_vm3, %v170_v41, 0.0 }
 0x18f   :  { %175 = vadd.xlane.f32.xlu2 %v174_v42 }
 0x19f   :  { %v244_v47 = vpop.permute.xlu1 %243 }
 0x1a0   :  { %256 = vmatpush.bf16.msra.mxu2 %v244_v47  ;;  %v2795_v47 = vunpack.c.l.b16 %v3068_v63 }
 0x1a7   :  { %265 = vrot.lane.b32.xlu2 %v2758_v27, %s2981_s20  ;;  %v442_v16 = vpop.permute.xlu1 %441 }
 0x1af   :  { %v422_v17 = vpop.permute.xlu1 %421 }
 0x1b7   :  { %v440_v20 = vpop.permute.xlu1 %439 }
 0x1bf   :  { %v420_v27 = vpop.permute.xlu1 %419 }
 0x1fa   :  { %v173_v44 = vpop.xlane.xlu2 %172 }
 0x1fb   :  { %v177_v45 = vmul.f32 %v173_v44, %v3051_v32 }
 0x1fd   :  { %v179_v46 = vadd.f32 1e-05, %v177_v45 }
 0x1ff   :  { %2844 = vrsqrt.f32 %v179_v46  ;;  %vm187_vm6 = vweird.f32 %v179_v46 }
 0x202   :  { %v176_v48 = vpop.xlane.xlu2 %175 }
 0x203   :  { %v178_v50 = vmul.f32 %v176_v48, %v3051_v32 }
 0x205   :  { %v2845_v51 = vpop.eup %2844  ;;  %v180_v52 = vadd.f32 1e-05, %v178_v50  ;;  %v627_v50 = vpack.c.b16 %v2795_v47, %v2795_v47 }
 0x206   :  { %v182_v53 = vmul.f32 %v2845_v51, %v179_v46  ;;  %vm188_vm5 = vweird.f32 %v2845_v51 }
 0x207   :  { %2846 = vrsqrt.f32 %v180_v52  ;;  %vm189_vm7 = vmor %vm187_vm6, %vm188_vm5  ;;  %vm197_vm9 = vweird.f32 %v180_v52 }
 0x208   :  { %v183_v54 = vmul.f32 %v2845_v51, %v182_v53 }
 0x20a   :  { %v184_v55 = vmul.f32 0.5, %v183_v54  ;;  %v266_v56 = vpop.permute.xlu2 %265 }
 0x20b   :  { %275 = vmatpush.bf16.msra.mxu3 %v266_v56 }
 0x20c   :  { %v185_v57 = vsub.f32 1.5, %v184_v55 }
 0x20d   :  { %v2847_v59 = vpop.eup %2846 }
 0x20e   :  { %v186_v60 = vmul.f32 %v2845_v51, %v185_v57  ;;  %v192_v61 = vmul.f32 %v2847_v59, %v180_v52  ;;  %vm198_vm8 = vweird.f32 %v2847_v59 }
 0x20f   :  { %276 = vmatpush.bf16.msra.mxu3 %v264_v58  ;;  %vm199_vm10 = vmor %vm197_vm9, %vm198_vm8 }
 0x210   :  { %v193_v62 = vmul.f32 %v2847_v59, %v192_v61  ;;  %v190_v0 = vsel %vm189_vm7, %v2845_v51, %v186_v60 }
 0x211   :  { %v201_v4 = vmul.f32 %v190_v0, %v167_v35 }
 0x212   :  { %v194_v1 = vmul.f32 0.5, %v193_v62 }
 0x213   :  { %v204_v8 = vmul.f32 %v2825_v3, %v201_v4 }
 0x214   :  { %v195_v2 = vsub.f32 1.5, %v194_v1 }
 0x215   :  { %v207_v11 = vadd.f32 %v2826_v7, %v204_v8 }
 0x216   :  { %v196_v5 = vmul.f32 %v2847_v59, %v195_v2 }
 0x218   :  { %v200_v6 = vsel %vm199_vm10, %v2847_v59, %v196_v5 }
 0x219   :  { %v202_v9 = vmul.f32 %v200_v6, %v168_v40 }
 0x21b   :  { %v205_v10 = vmul.f32 %v2825_v3, %v202_v9  ;;  %v2761_v3 = vld [vmem:[#allocation2 + $0x48] sm:$0xff] }
 0x21d   :  { %v208_v14 = vadd.f32 %v2826_v7, %v205_v10  ;;  %v2760_v7 = vld [vmem:[#allocation2 + $0x40] sm:$0xff] }
 0x21f   :  { %v3074_v15 = vpack.c.bf16 %v208_v14, %v207_v11 }
 0x221   :  { %2530 = vmatmul.msk.bf16.vlgmr.msra.gmra.mxu1 %vm151_vm3, %v3074_v15  ;;  %2531 = vmatmul.msk.bf16.vlgmr.msra.gmra.mxu2 %vm151_vm3, %v3074_v15 }
 0x222   :  { %2532 = vmatmul.msk.bf16.vlgmr.msra.gmra.mxu3 %vm151_vm3, %v3074_v15 }
 0x29e   :  { %v238_v21 = vpop.f32.mrf.mxu1 }
 0x2a4   :  { %v258_v19 = vpop.f32.mrf.mxu2 }
 0x2a5   :  { %v278_v23 = vpop.f32.mrf.mxu3  ;;  %2533 = vmatpush.xpose.msk.msrb.mxu1 %vm283_vm11, %v258_v19 }
 0x2a6   :  { %376 = vmatpush.msrb.mxu3 %v278_v23  ;;  %v240_v26 = vpop.f32.mrf.mxu1 }
 0x2a8   :  { %451 = vmatpush.bf16.msra.mxu3 %v442_v16  ;;  %2534 = vmatmul.msk.f32.vlgmr.msrb.gmra.mxu1 %vm283_vm11, %v238_v21 }
 0x2ac   :  { %452 = vmatpush.bf16.msra.mxu3 %v440_v20  ;;  %v260_v24 = vpop.f32.mrf.mxu2 }
 0x2ad   :  { %v280_v25 = vpop.f32.mrf.mxu3  ;;  %2535 = vmatpush.xpose.msk.msrb.mxu2 %vm283_vm11, %v260_v24 }
 0x2ae   :  { %399 = vmatpush.msra.mxu1 %v280_v25 }
 0x2b0   :  { %2536 = vmatmul.msk.f32.vlgmr.msrb.gmra.mxu2 %vm283_vm11, %v240_v26 }
 0x2b1   :  { %431 = vmatpush.bf16.msra.mxu2 %v422_v17 }
 0x2b5   :  { %432 = vmatpush.bf16.msra.mxu2 %v420_v27 }
 0x2b8   :  { %2543 = vmatmul.msk.bf16.vlgmr.msra.gmra.mxu2 %vm151_vm3, %v3074_v15 }
 0x325   :  { %v307_v31 = vpop.f32.mrf.mxu1 }
 0x326   :  { %v308_v33 = vadd.f32 %v307_v31, %v3090_v30 }
 0x328   :  { %v336_v34 = vsel %vm283_vm11, %v308_v33, -inf }
 0x329   :  { %337 = vmax.xlane.f32.xlu0 %v336_v34 }
 0x333   :  { %v333_v35 = vpop.f32.mrf.mxu2 }
 0x334   :  { %v334_v36 = vadd.f32 %v333_v35, %v3090_v30 }
 0x336   :  { %v339_v37 = vsel %vm283_vm11, %v334_v36, -inf }
 0x337   :  { %340 = vmax.xlane.f32.xlu1 %v339_v37 }
 0x33b   :  { %v434_v58 = vpop.f32.mrf.mxu2 }
 0x350   :  { %686 = vrot.lane.b32.xlu1 %v2761_v3, %s2995_s5 }
 0x358   :  { %666 = vrot.lane.b32.xlu1 %v2761_v3, %s2996_s6 }
 0x360   :  { %664 = vrot.lane.b32.xlu1 %v2760_v7, %s2996_s6 }
 0x39c   :  { %v338_v38 = vpop.xlane.xlu0 %337 }
 0x39d   :  { %v342_v39 = vsub.f32 %v308_v33, %v338_v38 }
 0x39f   :  { %v344_v12 = vmul.f32 1.442695, %v342_v39  ;;  %v600_v39 = vld [vmem:[#allocation2 + $0x44] sm:$0xff]  }
 0x3a1   :  { %2848 = vpow2.f32 %v344_v12  ;;  %v602_v12 = vunpack.c.l.b16 %v600_v39 }
 0x3a7   :  { %v2849_v13 = vpop.eup %2848 }
 0x3a8   :  { %v348_v40 = vsel %vm283_vm11, %v2849_v13, 0.0 }
 0x3a9   :  { %349 = vadd.xlane.f32.xlu2 %v348_v40 }
 0x3aa   :  { %v341_v41 = vpop.xlane.xlu1 %340 }
 0x3ab   :  { %v343_v42 = vsub.f32 %v334_v36, %v341_v41 }
 0x3ad   :  { %v346_v43 = vmul.f32 1.442695, %v343_v42 }
 0x3af   :  { %2850 = vpow2.f32 %v346_v43 }
 0x3b5   :  { %v2851_v44 = vpop.eup %2850 }
 0x3b6   :  { %v351_v45 = vsel %vm283_vm11, %v2851_v44, 0.0 }
 0x3b7   :  { %352 = vadd.xlane.f32.xlu0 %v351_v45 }
 0x3c1   :  { %461 = vrot.lane.b32.xlu2 %v3061_v49, %s2993_s30 }
 0x3c2   :  { %v687_v8 = vpop.permute.xlu1 %686 }
 0x3c9   :  { %628 = vrot.lane.b32.xlu2 %v627_v50, %s2994_s4 }
 0x3ca   :  { %v667_v23 = vpop.permute.xlu1 %666 }
 0x3cb   :  { %459 = vrot.lane.b32.xlu0 %v3068_v63, %s2993_s30  ;;  %v436_v63 = vpop.f32.mrf.mxu2 }
 0x3d2   :  { %v665_v24 = vpop.permute.xlu1 %664 }
 0x41c   :  { %v350_v46 = vpop.xlane.xlu2 %349 }
 0x41d   :  { %2852 = vrcp.f32 %v350_v46 }
 0x423   :  { %v2853_v48 = vpop.eup %2852 }
 0x424   :  { %v356_v51 = vmul.f32 %v2853_v48, %v2849_v13  ;;  %v462_v52 = vpop.permute.xlu2 %461  ;;  %v603_v13 = vpack.c.b16 %v602_v12, %v602_v12 }
 0x425   :  { %471 = vmatpush.bf16.msrb.mxu1 %v462_v52 }
 0x426   :  { %2537 = vmatmul.msk.f32.vlgmr.msrb.gmra.mxu3 %vm283_vm11, %v356_v51  ;;  %v2763_v51 = vld [vmem:[#allocation2 + $0x48] sm:$0xff] }
 0x42a   :  { %v353_v53 = vpop.xlane.xlu0 %352 }
 0x42b   :  { %2854 = vrcp.f32 %v353_v53 }
 0x42c   :  { %v629_v59 = vpop.permute.xlu2 %628 }
 0x42d   :  { %v634_v61 = vsel %vm609_vm13, %v629_v59, 0  ;;  %v2762_v59 = vld [vmem:[#allocation2 + $0x40] sm:$0xff] }
 0x42e   :  { %2544 = vmatmul.msk.bf16.vlgmr.msra.gmra.mxu3 %vm151_vm3, %v3074_v15 }
 0x431   :  { %v2855_v49 = vpop.eup %2854 }
 0x432   :  { %v357_v54 = vmul.f32 %v2855_v49, %v2851_v44 }
 0x434   :  { %2538 = vmatmul.msk.f32.vlgmr.msra.gmra.mxu1 %vm283_vm11, %v357_v54 }
 0x43d   :  { %v460_v55 = vpop.permute.xlu0 %459 }
 0x43e   :  { %472 = vmatpush.bf16.msrb.mxu1 %v460_v55 }
 0x441   :  { %2545 = vmatmul.msk.bf16.vlgmr.msrb.gmra.mxu1 %vm151_vm3, %v3074_v15 }
 0x4a9   :  { %v378_v56 = vpop.f32.mrf.mxu3 }
 0x4b1   :  { %v454_v57 = vpop.f32.mrf.mxu3  ;;  %v401_v60 = vpop.f32.mrf.mxu1 }
 0x4b2   :  { %2546 = vmatpush.xpose.msk.msrb.mxu3 %vm283_vm11, %v454_v57  ;;  %v404_v1 = vpack.c.bf16 %v401_v60, %v378_v56 }
 0x4b5   :  { %2547 = vmatmul.msk.f32.vlgmr.msrb.gmra.mxu3 %vm283_vm11, %v434_v58 }
 0x4b9   :  { %v456_v62 = vpop.f32.mrf.mxu3 }
 0x4ba   :  { %2548 = vmatpush.xpose.msk.msrb.mxu2 %vm283_vm11, %v456_v62 }
 0x4bd   :  { %2549 = vmatmul.msk.f32.vlgmr.msrb.gmra.mxu2 %vm283_vm11, %v436_v63 }
 0x4be   :  { %643 = vmatpush.bf16.msra.mxu2 %v634_v61  ;;  %v474_v0 = vpop.f32.mrf.mxu1  ;;  %v847_v61 = vunpack.c.h.b16 %v600_v39 }
 0x4bf   :  { %571 = vmatpush.msra.mxu3 %v474_v0 }
 0x4c0   :  { %v848_v62 = vpack.c.b16 %v847_v61, %v847_v61  ;;  %v1068_v61 = vld [vmem:[#allocation2 + $0x4c] sm:$0xf] }
 0x4c1   :  { %676 = vmatpush.bf16.msrb.mxu3 %v667_v23 }
 0x4c2   :  { %696 = vmatpush.bf16.msrb.mxu2 %v687_v8 }
 0x4c5   :  { %2553 = vmatmul.msk.bf16.vlgmr.msra.gmra.mxu2 %vm283_vm11, %v404_v1  ;;  %677 = vmatpush.bf16.msrb.mxu3 %v665_v24 }
 0x4c6   :  { %v476_v2 = vpop.f32.mrf.mxu1 }
 0x4c7   :  { %594 = vmatpush.msrb.mxu0 %v476_v2 }
 0x538   :  { %v502_v4 = vpop.f32.mrf.mxu3 }
 0x539   :  { %v503_v5 = vadd.f32 %v502_v4, %v3090_v30 }
 0x53b   :  { %v531_v6 = vsel %vm283_vm11, %v503_v5, -inf }
 0x53c   :  { %532 = vmax.xlane.f32.xlu0 %v531_v6 }
 0x540   :  { %v528_v17 = vpop.f32.mrf.mxu2 }
 0x541   :  { %v529_v19 = vadd.f32 %v528_v17, %v3090_v30 }
 0x543   :  { %v534_v21 = vsel %vm283_vm11, %v529_v19, -inf }
 0x548   :  { %v3127_v27 = vpop.f32.mrf.mxu2 }
 0x550   :  { %684 = vrot.lane.b32.xlu0 %v2760_v7, %s2995_s5  ;;  %v3130_v34 = vpop.f32.mrf.mxu2 }
 0x558   :  { %706 = vrot.lane.b32.xlu0 %v2761_v3, %s2997_s7 }
 0x560   :  { %704 = vrot.lane.b32.xlu0 %v2760_v7, %s2997_s7 }
 0x5af   :  { %v533_v9 = vpop.xlane.xlu0 %532 }
 0x5b0   :  { %v537_v10 = vsub.f32 %v503_v5, %v533_v9 }
 0x5b2   :  { %v539_v11 = vmul.f32 1.442695, %v537_v10 }
 0x5b4   :  { %2856 = vpow2.f32 %v539_v11 }
 0x5ba   :  { %v2857_v14 = vpop.eup %2856 }
 0x5bb   :  { %v543_v16 = vsel %vm283_vm11, %v2857_v14, 0.0 }
 0x5bc   :  { %544 = vadd.xlane.f32.xlu2 %v543_v16 }
 0x5c2   :  { %v685_v20 = vpop.permute.xlu0 %684 }
 0x5c3   :  { %697 = vmatpush.bf16.msrb.mxu2 %v685_v20 }
 0x5c4   :  { %535 = vmax.xlane.f32.xlu2 %v534_v21 }
 0x5c6   :  { %2563 = vmatmul.msk.bf16.vlgmr.msrb.gmra.mxu2 %vm151_vm3, %v3074_v15 }
 0x5ca   :  { %v707_v48 = vpop.permute.xlu0 %706 }
 0x5d2   :  { %v705_v50 = vpop.permute.xlu0 %704 }
 0x5dc   :  { %604 = vrot.lane.b32.xlu2 %v603_v13, %s2994_s4 }
 0x62f   :  { %v545_v25 = vpop.xlane.xlu2 %544 }
 0x630   :  { %2858 = vrcp.f32 %v545_v25 }
 0x636   :  { %v2859_v26 = vpop.eup %2858 }
 0x637   :  { %v551_v28 = vmul.f32 %v2859_v26, %v2857_v14  ;;  %v536_v29 = vpop.xlane.xlu2 %535 }
 0x638   :  { %v538_v31 = vsub.f32 %v529_v19, %v536_v29 }
 0x639   :  { %2550 = vmatmul.msk.f32.vlgmr.msra.gmra.mxu3 %vm283_vm11, %v551_v28 }
 0x63a   :  { %v541_v33 = vmul.f32 1.442695, %v538_v31 }
 0x63c   :  { %2860 = vpow2.f32 %v541_v33 }
 0x63f   :  { %v605_v46 = vpop.permute.xlu2 %604 }
 0x640   :  { %v611_v47 = vsel %vm609_vm13, %v605_v46, 0 }
 0x641   :  { %2562 = vmatmul.msk.bf16.vlgmr.msrb.gmra.mxu3 %vm151_vm3, %v3074_v15  ;;  %620 = vmatpush.bf16.msra.mxu1 %v611_v47 }
 0x642   :  { %v2861_v35 = vpop.eup %2860 }
 0x643   :  { %v546_v36 = vsel %vm283_vm11, %v2861_v35, 0.0 }
 0x644   :  { %547 = vadd.xlane.f32.xlu1 %v546_v36 }
 0x645   :  { %716 = vmatpush.bf16.msrb.mxu1 %v707_v48 }
 0x649   :  { %v699_v37 = vpop.f32.mrf.mxu2  ;;  %717 = vmatpush.bf16.msrb.mxu1 %v705_v50 }
 0x64a   :  { %2565 = vmatpush.xpose.msk.msra.mxu2 %vm283_vm11, %v699_v37 }
 0x651   :  { %v701_v38 = vpop.f32.mrf.mxu2 }
 0x652   :  { %2567 = vmatpush.xpose.msk.msra.mxu3 %vm283_vm11, %v701_v38 }
 0x65d   :  { %909 = vrot.lane.b32.xlu1 %v2763_v51, %s2998_s8 }
 0x6b7   :  { %v548_v40 = vpop.xlane.xlu1 %547 }
 0x6b8   :  { %2862 = vrcp.f32 %v548_v40 }
 0x6bc   :  { %v573_v41 = vpop.f32.mrf.mxu3 }
 0x6be   :  { %v2863_v42 = vpop.eup %2862 }
 0x6bf   :  { %v552_v43 = vmul.f32 %v2863_v42, %v2861_v35 }
 0x6c1   :  { %2551 = vmatmul.msk.f32.vlgmr.msrb.gmra.mxu0 %vm283_vm11, %v552_v43 }
 0x6c4   :  { %v679_v44 = vpop.f32.mrf.mxu3 }
 0x6c5   :  { %2566 = vmatmul.msk.f32.vlgmr.msra.gmra.mxu2 %vm283_vm11, %v679_v44 }
 0x6cc   :  { %v681_v45 = vpop.f32.mrf.mxu3 }
 0x6cd   :  { %2568 = vmatmul.msk.f32.vlgmr.msra.gmra.mxu3 %vm283_vm11, %v681_v45 }
 0x6cf   :  { %v910_v60 = vpop.permute.xlu1 %909 }
 0x73e   :  { %v596_v52 = vpop.f32.mrf.mxu0 }
 0x73f   :  { %v599_v53 = vpack.c.bf16 %v596_v52, %v573_v41 }
 0x741   :  { %2552 = vmatmul.msk.bf16.vlgmr.msra.gmra.mxu1 %vm283_vm11, %v599_v53 }
 0x742   :  { %919 = vmatpush.bf16.msra.mxu1 %v910_v60 }
 0x748   :  { %v747_v49 = vpop.f32.mrf.mxu2 }
 0x749   :  { %v748_v54 = vadd.f32 %v747_v49, %v3090_v30 }
 0x74b   :  { %v776_v55 = vsel %vm283_vm11, %v748_v54, -inf }
 0x74c   :  { %777 = vmax.xlane.f32.xlu2 %v776_v55 }
 0x750   :  { %v773_v56 = vpop.f32.mrf.mxu3 }
 0x751   :  { %v774_v57 = vadd.f32 %v773_v56, %v3090_v30  ;;  %2564 = vmatmul.msk.bf16.vlgmr.msrb.gmra.mxu1 %vm151_vm3, %v3074_v15 }
 0x753   :  { %v779_v58 = vsel %vm283_vm11, %v774_v57, -inf }
 0x754   :  { %780 = vmax.xlane.f32.xlu0 %v779_v58 }
 0x764   :  { %907 = vrot.lane.b32.xlu2 %v2762_v59, %s2998_s8 }
 0x768   :  { %889 = vrot.lane.b32.xlu0 %v2763_v51, %s2999_s9 }
 0x770   :  { %849 = vrot.lane.b32.xlu0 %v848_v62, %s2994_s4  ;;  %v1070_v62 = vunpack.c.l.b16 %v1068_v61 }
 0x778   :  { %927 = vrot.lane.b32.xlu0 %v2762_v59, %s3000_s10 }
 0x7be   :  { %v3156_v63 = vpop.f32.mrf.mxu1 }
 0x7bf   :  { %v778_v0 = vpop.xlane.xlu2 %777  ;;  %v646_v42 = vadd.f32 %v3127_v27, %v3156_v63  ;;  %v1071_v63 = vpack.c.b16 %v1070_v62, %v1070_v62  ;;  %v2829_v62 = vld [vmem:[#allocation4 + $0x14] ss:$0 sm:$0xff] }
 0x7c0   :  { %v782_v1 = vsub.f32 %v748_v54, %v778_v0 }
 0x7c2   :  { %v784_v2 = vmul.f32 1.442695, %v782_v1 }
 0x7c4   :  { %2864 = vpow2.f32 %v784_v2 }
 0x7c6   :  { %v624_v3 = vpop.f32.mrf.mxu1 }
 0x7c7   :  { %v908_v4 = vpop.permute.xlu2 %907  ;;  %v781_v5 = vpop.xlane.xlu0 %780  ;;  %v648_v44 = vadd.f32 %v3130_v34, %v624_v3 }
 0x7c8   :  { %v783_v6 = vsub.f32 %v774_v57, %v781_v5  ;;  %920 = vmatpush.bf16.msra.mxu1 %v908_v4 }
 0x7ca   :  { %v2865_v7 = vpop.eup %2864  ;;  %v786_v8 = vmul.f32 1.442695, %v783_v6 }
 0x7cb   :  { %2581 = vmatmul.msk.bf16.vlgmr.msra.gmra.mxu1 %vm151_vm3, %v3074_v15  ;;  %v788_v9 = vsel %vm283_vm11, %v2865_v7, 0.0 }
 0x7cc   :  { %2866 = vpow2.f32 %v786_v8  ;;  %789 = vadd.xlane.f32.xlu1 %v788_v9 }
 0x7ce   :  { %v719_v10 = vpop.f32.mrf.mxu1 }
 0x7cf   :  { %816 = vmatpush.msra.mxu0 %v719_v10 }
 0x7d2   :  { %v2867_v11 = vpop.eup %2866 }
 0x7d3   :  { %v791_v14 = vsel %vm283_vm11, %v2867_v11, 0.0 }
 0x7d4   :  { %792 = vadd.xlane.f32.xlu1 %v791_v14 }
 0x7d6   :  { %v721_v16 = vpop.f32.mrf.mxu1 }
 0x7d7   :  { %839 = vmatpush.msrb.mxu2 %v721_v16  ;;  %v2827_v16 = vld [vmem:[#allocation4 + $0x12] ss:$0 sm:$0xff] }
 0x7da   :  { %v890_v17 = vpop.permute.xlu0 %889 }
 0x7db   :  { %899 = vmatpush.bf16.msrb.mxu0 %v890_v17 }
 0x7e2   :  { %v850_v19 = vpop.permute.xlu0 %849 }
 0x7e3   :  { %v855_v20 = vsel %vm609_vm13, %v850_v19, 0 }
 0x7e4   :  { %864 = vmatpush.bf16.msrb.mxu3 %v855_v20 }
 0x7ea   :  { %v928_v36 = vpop.permute.xlu0 %927 }
 0x7ed   :  { %887 = vrot.lane.b32.xlu1 %v2762_v59, %s2999_s9 }
 0x7f5   :  { %929 = vrot.lane.b32.xlu1 %v2763_v51, %s3000_s10 }
 0x83f   :  { %v790_v21 = vpop.xlane.xlu1 %789 }
 0x840   :  { %2868 = vrcp.f32 %v790_v21 }
 0x846   :  { %v2869_v23 = vpop.eup %2868 }
 0x847   :  { %v796_v24 = vmul.f32 %v2869_v23, %v2865_v7  ;;  %v793_v25 = vpop.xlane.xlu1 %792 }
 0x848   :  { %2870 = vrcp.f32 %v793_v25  ;;  %v922_v26 = vpop.f32.mrf.mxu1 }
 0x849   :  { %2569 = vmatmul.msk.f32.vlgmr.msra.gmra.mxu0 %vm283_vm11, %v796_v24  ;;  %2583 = vmatpush.xpose.msk.msra.mxu3 %vm283_vm11, %v922_v26 }
 0x84e   :  { %v2871_v28 = vpop.eup %2870 }
 0x84f   :  { %v797_v29 = vmul.f32 %v2871_v28, %v2867_v11 }
 0x850   :  { %v924_v33 = vpop.f32.mrf.mxu1 }
 0x851   :  { %2570 = vmatmul.msk.f32.vlgmr.msrb.gmra.mxu2 %vm283_vm11, %v797_v29 }
 0x85f   :  { %v888_v31 = vpop.permute.xlu1 %887 }
 0x860   :  { %900 = vmatpush.bf16.msrb.mxu0 %v888_v31 }
 0x863   :  { %2580 = vmatmul.msk.bf16.vlgmr.msrb.gmra.mxu0 %vm151_vm3, %v3074_v15 }
 0x864   :  { %2585 = vmatpush.xpose.msk.msra.mxu0 %vm283_vm11, %v924_v33 }
 0x867   :  { %v930_v35 = vpop.permute.xlu1 %929 }
 0x868   :  { %939 = vmatpush.bf16.msra.mxu2 %v930_v35 }
 0x86c   :  { %940 = vmatpush.bf16.msra.mxu2 %v928_v36 }
 0x86f   :  { %2582 = vmatmul.msk.bf16.vlgmr.msra.gmra.mxu2 %vm151_vm3, %v3074_v15 }
 0x8c6   :  { %v818_v37 = vpop.f32.mrf.mxu0 }
 0x8d4   :  { %v841_v38 = vpop.f32.mrf.mxu2 }
 0x8d5   :  { %v844_v39 = vpack.c.bf16 %v841_v38, %v818_v37 }
 0x8d7   :  { %2571 = vmatmul.msk.bf16.vlgmr.msrb.gmra.mxu3 %vm283_vm11, %v844_v39  ;;  %v2765_v39 = vld [vmem:[#allocation2 + $0x58] sm:$0xff] }
 0x8d8   :  { %1182 = vmatpush.bf16.msrb.mxu0 %v2765_v39 }
 0x8e0   :  { %v902_v12 = vpop.f32.mrf.mxu0 }
 0x8e7   :  { %2584 = vmatmul.msk.f32.vlgmr.msra.gmra.mxu3 %vm283_vm11, %v902_v12 }
 0x8e8   :  { %v904_v13 = vpop.f32.mrf.mxu0 }
 0x8e9   :  { %2586 = vmatmul.msk.f32.vlgmr.msra.gmra.mxu0 %vm283_vm11, %v904_v13 }
 0x8f2   :  { %v942_v40 = vpop.f32.mrf.mxu2 }
 0x8f3   :  { %1039 = vmatpush.msrb.mxu1 %v942_v40 }
 0x8fa   :  { %v944_v41 = vpop.f32.mrf.mxu2 }
 0x8fb   :  { %1062 = vmatpush.msrb.mxu2 %v944_v41  ;;  %v2764_v41 = vld [vmem:[#allocation2 + $0x50] sm:$0xff] }
 0x8fc   :  { %1183 = vmatpush.bf16.msrb.mxu0 %v2764_v41 }
 0x95a   :  { %v866_v43 = vpop.f32.mrf.mxu3 }
 0x95b   :  { %v871_v15 = vadd.f32 %v866_v43, %v646_v42  ;;  %v2773_v42 = vld [vmem:[#allocation2 + $0x98] sm:$0xff] }
 0x95c   :  { %1258 = vmatpush.bf16.msra.mxu1 %v2773_v42  ;;  %v2774_v42 = vld [vmem:[#allocation2 + $0xa0] sm:$0xff] }
 0x962   :  { %v868_v45 = vpop.f32.mrf.mxu3 }
 0x963   :  { %v872_v46 = vadd.f32 %v868_v45, %v648_v44  ;;  %v2772_v44 = vld [vmem:[#allocation2 + $0x90] sm:$0xff] }
 0x964   :  { %1259 = vmatpush.bf16.msra.mxu1 %v2772_v44 }
 0x966   :  { %v996_v47 = vpop.f32.mrf.mxu0 }
 0x967   :  { %v997_v48 = vadd.f32 %v996_v47, %v3090_v30 }
 0x969   :  { %v1002_v50 = vsel %vm283_vm11, %v997_v48, -inf }
 0x96a   :  { %1003 = vmax.xlane.f32.xlu2 %v1002_v50  ;;  %v970_v51 = vpop.f32.mrf.mxu3 }
 0x96b   :  { %v971_v52 = vadd.f32 %v970_v51, %v3090_v30 }
 0x96d   :  { %v999_v53 = vsel %vm283_vm11, %v971_v52, -inf }
 0x96e   :  { %1000 = vmax.xlane.f32.xlu1 %v999_v53 }
 0x987   :  { %1072 = vrot.lane.b32.xlu1 %v1071_v63, %s2994_s4 }
 0x9dd   :  { %v1004_v49 = vpop.xlane.xlu2 %1003 }
 0x9de   :  { %v1006_v27 = vsub.f32 %v997_v48, %v1004_v49  ;;  %v2771_v48 = vld [vmem:[#allocation2 + $0x88] sm:$0xff] }
 0x9df   :  { %1260 = vmatpush.bf16.msra.mxu1 %v2771_v48 }
 0x9e0   :  { %v1009_v54 = vmul.f32 1.442695, %v1006_v27 }
 0x9e1   :  { %v1001_v55 = vpop.xlane.xlu1 %1000 }
 0x9e2   :  { %2872 = vpow2.f32 %v1009_v54  ;;  %v1005_v34 = vsub.f32 %v971_v52, %v1001_v55  ;;  %v2770_v52 = vld [vmem:[#allocation2 + $0x80] sm:$0xff] }
 0x9e3   :  { %1261 = vmatpush.bf16.msra.mxu1 %v2770_v52 }
 0x9e4   :  { %v1007_v56 = vmul.f32 1.442695, %v1005_v34 }
 0x9e6   :  { %2874 = vpow2.f32 %v1007_v56 }
 0x9e8   :  { %v2873_v57 = vpop.eup %2872 }
 0x9e9   :  { %v1014_v58 = vsel %vm283_vm11, %v2873_v57, 0.0 }
 0x9ea   :  { %1015 = vadd.xlane.f32.xlu0 %v1014_v58  ;;  %v2828_v58 = vld [vmem:[#allocation4 + $0x13] ss:$0 sm:$0xff] }
 0x9ec   :  { %v2875_v59 = vpop.eup %2874 }
 0x9ed   :  { %v1011_v60 = vsel %vm283_vm11, %v2875_v59, 0.0 }
 0x9ee   :  { %1012 = vadd.xlane.f32.xlu2 %v1011_v60 }
 0x9f9   :  { %v1073_v6 = vpop.permute.xlu1 %1072 }
 0x9fa   :  { %v1078_v7 = vsel %vm609_vm13, %v1073_v6, 0  ;;  %v2768_v6 = vld [vmem:[#allocation2 + $0x70] sm:$0xff] }
 0x9fb   :  { %1087 = vmatpush.bf16.msrb.mxu3 %v1078_v7  ;;  %v2767_v7 = vld [vmem:[#allocation2 + $0x68] sm:$0xff] }
 0xa5d   :  { %v1016_v0 = vpop.xlane.xlu0 %1015 }
 0xa5e   :  { %2876 = vrcp.f32 %v1016_v0 }
 0xa61   :  { %v1013_v1 = vpop.xlane.xlu2 %1012 }
 0xa62   :  { %2878 = vrcp.f32 %v1013_v1 }
 0xa64   :  { %v2877_v2 = vpop.eup %2876 }
 0xa65   :  { %v1020_v3 = vmul.f32 %v2877_v2, %v2873_v57 }
 0xa67   :  { %2588 = vmatmul.msk.f32.vlgmr.msrb.gmra.mxu2 %vm283_vm11, %v1020_v3 }
 0xa68   :  { %v2879_v4 = vpop.eup %2878 }
 0xa69   :  { %v1019_v5 = vmul.f32 %v2879_v4, %v2875_v59 }
 0xa6b   :  { %2587 = vmatmul.msk.f32.vlgmr.msrb.gmra.mxu1 %vm283_vm11, %v1019_v5  ;;  %v2769_v5 = vld [vmem:[#allocation2 + $0x78] sm:$0xff] }
 0xa6c   :  { %1262 = vmatpush.bf16.msra.mxu1 %v2769_v5 }
 0xa70   :  { %1263 = vmatpush.bf16.msra.mxu1 %v2768_v6 }
 0xa74   :  { %1264 = vmatpush.bf16.msra.mxu1 %v2767_v7 }
 0xae8   :  { %v1041_v8 = vpop.f32.mrf.mxu1 }
 0xaea   :  { %v1064_v9 = vpop.f32.mrf.mxu2 }
 0xaeb   :  { %v1067_v10 = vpack.c.bf16 %v1064_v9, %v1041_v8  ;;  %v2766_v8 = vld [vmem:[#allocation2 + $0x60] sm:$0xff] }
 0xaec   :  { %1265 = vmatpush.bf16.msra.mxu1 %v2766_v8 }
 0xaed   :  { %2589 = vmatmul.msk.bf16.vlgmr.msrb.gmra.mxu3 %vm283_vm11, %v1067_v10  ;;  %v2830_v10 = vld [vmem:[#allocation4 + $0x16] ss:$0 sm:$0xff] }
 0xb70   :  { %v1089_v11 = vpop.f32.mrf.mxu3 }
 0xb71   :  { %v1094_v14 = vadd.f32 %v1089_v11, %v871_v15 }
 0xb73   :  { %v1096_v17 = vadd.f32 %v1094_v14, %v3040_v18 }
 0xb75   :  { %v3191_v19 = vadd.f32 %v2827_v16, %v1096_v17 }
 0xb77   :  { %v1105_v20 = vsel %vm151_vm3, %v3191_v19, 0.0 }
 0xb78   :  { %1106 = vadd.xlane.f32.xlu0 %v1105_v20  ;;  %v1091_v21 = vpop.f32.mrf.mxu3 }
 0xb79   :  { %v1095_v23 = vadd.f32 %v1091_v21, %v872_v46 }
 0xb7b   :  { %v1097_v24 = vadd.f32 %v1095_v23, %v3044_v22  ;;  %v2831_v23 = vld [vmem:[#allocation4 + $0x15] ss:$0 sm:$0xff] }
 0xb7d   :  { %v3196_v25 = vadd.f32 %v2827_v16, %v1097_v24 }
 0xb7f   :  { %v1108_v26 = vsel %vm151_vm3, %v3196_v25, 0.0 }
 0xb80   :  { %1109 = vadd.xlane.f32.xlu2 %v1108_v26 }
 0xbeb   :  { %v1107_v28 = vpop.xlane.xlu0 %1106 }
 0xbec   :  { %v1111_v29 = vmul.f32 %v1107_v28, %v3051_v32 }
 0xbee   :  { %v1113_v18 = vsub.f32 %v3191_v19, %v1111_v29 }
 0xbf0   :  { %v1115_v31 = vmul.f32 %v1113_v18, %v1113_v18 }
 0xbf2   :  { %v1117_v33 = vsel %vm151_vm3, %v1115_v31, 0.0 }
 0xbf3   :  { %1118 = vadd.xlane.f32.xlu0 %v1117_v33  ;;  %v1110_v35 = vpop.xlane.xlu2 %1109 }
 0xbf4   :  { %v1112_v36 = vmul.f32 %v1110_v35, %v3051_v32 }
 0xbf6   :  { %v1114_v22 = vsub.f32 %v3196_v25, %v1112_v36 }
 0xbf8   :  { %v1116_v37 = vmul.f32 %v1114_v22, %v1114_v22 }
 0xbfa   :  { %v1120_v38 = vsel %vm151_vm3, %v1116_v37, 0.0 }
 0xbfb   :  { %1121 = vadd.xlane.f32.xlu2 %v1120_v38 }
 0xc66   :  { %v1119_v12 = vpop.xlane.xlu0 %1118 }
 0xc67   :  { %v1123_v13 = vmul.f32 %v1119_v12, %v3051_v32 }
 0xc69   :  { %v1125_v40 = vadd.f32 1e-05, %v1123_v13 }
 0xc6b   :  { %2880 = vrsqrt.f32 %v1125_v40  ;;  %vm1133_vm15 = vweird.f32 %v1125_v40 }
 0xc6e   :  { %v1122_v43 = vpop.xlane.xlu2 %1121 }
 0xc6f   :  { %v1124_v15 = vmul.f32 %v1122_v43, %v3051_v32 }
 0xc71   :  { %v2881_v45 = vpop.eup %2880  ;;  %v1126_v46 = vadd.f32 1e-05, %v1124_v15 }
 0xc72   :  { %v1128_v47 = vmul.f32 %v2881_v45, %v1125_v40  ;;  %vm1134_vm14 = vweird.f32 %v2881_v45 }
 0xc73   :  { %2882 = vrsqrt.f32 %v1126_v46  ;;  %vm1135_vm0 = vmor %vm1133_vm15, %vm1134_vm14  ;;  %vm1143_vm2 = vweird.f32 %v1126_v46 }
 0xc74   :  { %v1129_v50 = vmul.f32 %v2881_v45, %v1128_v47 }
 0xc76   :  { %v1130_v51 = vmul.f32 0.5, %v1129_v50 }
 0xc78   :  { %v1131_v53 = vsub.f32 1.5, %v1130_v51 }
 0xc79   :  { %v2883_v49 = vpop.eup %2882 }
 0xc7a   :  { %v1132_v27 = vmul.f32 %v2881_v45, %v1131_v53  ;;  %v1138_v54 = vmul.f32 %v2883_v49, %v1126_v46  ;;  %vm1144_vm1 = vweird.f32 %v2883_v49 }
 0xc7b   :  { %vm1145_vm4 = vmor %vm1143_vm2, %vm1144_vm1 }
 0xc7c   :  { %v1139_v55 = vmul.f32 %v2883_v49, %v1138_v54  ;;  %v1136_v34 = vsel %vm1135_vm0, %v2881_v45, %v1132_v27 }
 0xc7d   :  { %v1147_v59 = vmul.f32 %v1136_v34, %v1113_v18 }
 0xc7e   :  { %v1140_v56 = vmul.f32 0.5, %v1139_v55 }
 0xc7f   :  { %v1150_v63 = vmul.f32 %v2828_v58, %v1147_v59 }
 0xc80   :  { %v1141_v57 = vsub.f32 1.5, %v1140_v56 }
 0xc81   :  { %v1153_v2 = vadd.f32 %v2829_v62, %v1150_v63 }
 0xc82   :  { %v1142_v60 = vmul.f32 %v2883_v49, %v1141_v57 }
 0xc84   :  { %v1146_v61 = vsel %vm1145_vm4, %v2883_v49, %v1142_v60  ;;  %v2832_v60 = vld [vmem:[#allocation4 + $0x17] ss:$0 sm:$0xff] }
 0xc85   :  { %v1148_v0 = vmul.f32 %v1146_v61, %v1114_v22 }
 0xc87   :  { %v1151_v1 = vmul.f32 %v2828_v58, %v1148_v0 }
 0xc89   :  { %v1154_v3 = vadd.f32 %v2829_v62, %v1151_v1  ;;  %v2833_v1 = vld [vmem:[#allocation4 + $0x18] ss:$0 sm:$0xff] }
 0xc8b   :  { %v1155_v4 = vpack.c.bf16 %v1154_v3, %v1153_v2 }
 0xc8d   :  { %2598 = vmatmul.msk.bf16.vlgmr.msrb.gmra.mxu0 %vm151_vm3, %v1155_v4 }
 0xd0a   :  { %v1185_v9 = vpop.f32.mrf.mxu0 }
 0xd0b   :  { %v1186_v11 = vadd.f32 %v2830_v10, %v1185_v9 }
 0xd0d   :  { %v1190_v17 = vmax.f32 %v1186_v11, 0.0 }
 0xd12   :  { %v1187_v14 = vpop.f32.mrf.mxu0 }
 0xd13   :  { %v1188_v16 = vadd.f32 %v2830_v10, %v1187_v14 }
 0xd15   :  { %v1191_v20 = vmax.f32 %v1188_v16, 0.0 }
 0xd17   :  { %v1192_v21 = vpack.c.bf16 %v1191_v20, %v1190_v17  ;;  %v2776_v20 = vld [vmem:[#allocation2 + $0xa8] sm:$0xff] }
 0xd19   :  { %1266 = vmatmul.bf16.vlgmr.msra.gmra.mxu1 %v1192_v21  ;;  %v3245_v21 = vld [vmem:[#allocation2 + $0xa0] sm:$0xff]  }
 0xd96   :  { %v1267_v24 = vpop.f32.mrf.mxu1 }
 0xd97   :  { %v1268_v26 = vadd.f32 %v2831_v23, %v1267_v24 }
 0xd99   :  { %v3210_v28 = vadd.f32 %v1268_v26, %v3191_v19 }
 0xd9b   :  { %v1277_v29 = vsel %vm151_vm3, %v3210_v28, 0.0 }
 0xd9c   :  { %1278 = vadd.xlane.f32.xlu0 %v1277_v29 }
 0xd9e   :  { %v1269_v18 = vpop.f32.mrf.mxu1 }
 0xd9f   :  { %v1270_v31 = vadd.f32 %v2831_v23, %v1269_v18 }
 0xda1   :  { %v3215_v33 = vadd.f32 %v1270_v31, %v3196_v25  ;;  %v2775_v25 = vld [vmem:[#allocation2 + $0xa8] sm:$0xff] }
 0xda2   :  { %1353 = vmatpush.bf16.msra.mxu2 %v2775_v25 }
 0xda3   :  { %v1280_v35 = vsel %vm151_vm3, %v3215_v33, 0.0 }
 0xda4   :  { %1281 = vadd.xlane.f32.xlu2 %v1280_v35 }
 0xda6   :  { %1354 = vmatpush.bf16.msra.mxu2 %v2774_v42 }
 0xdbc   :  { %1363 = vrot.lane.b32.xlu2 %v2775_v25, %s2989_s0 }
 0xdc4   :  { %1383 = vrot.lane.b32.xlu2 %v2775_v25, %s2981_s20 }
 0xe0f   :  { %v1279_v36 = vpop.xlane.xlu0 %1278 }
 0xe10   :  { %v1283_v22 = vmul.f32 %v1279_v36, %v3051_v32 }
 0xe12   :  { %v1285_v37 = vsub.f32 %v3210_v28, %v1283_v22 }
 0xe14   :  { %v1287_v19 = vmul.f32 %v1285_v37, %v1285_v37 }
 0xe16   :  { %v1289_v38 = vsel %vm151_vm3, %v1287_v19, 0.0 }
 0xe17   :  { %v1282_v39 = vpop.xlane.xlu2 %1281  ;;  %1290 = vadd.xlane.f32.xlu1 %v1289_v38 }
 0xe18   :  { %v1284_v12 = vmul.f32 %v1282_v39, %v3051_v32 }
 0xe1a   :  { %v1286_v13 = vsub.f32 %v3215_v33, %v1284_v12 }
 0xe1c   :  { %v1288_v40 = vmul.f32 %v1286_v13, %v1286_v13 }
 0xe1e   :  { %v1292_v41 = vsel %vm151_vm3, %v1288_v40, 0.0 }
 0xe1f   :  { %1293 = vadd.xlane.f32.xlu0 %v1292_v41  ;;  %v1364_v43 = vpop.permute.xlu2 %1363 }
 0xe20   :  { %1373 = vmatpush.bf16.msra.mxu3 %v1364_v43 }
 0xe27   :  { %v1384_v44 = vpop.permute.xlu2 %1383 }
 0xe28   :  { %1393 = vmatpush.bf16.msra.mxu0 %v1384_v44 }
 0xe30   :  { %1558 = vrot.lane.b32.xlu1 %v2776_v20, %s2990_s28 }
 0xe33   :  { %1361 = vrot.lane.b32.xlu0 %v2774_v42, %s2989_s0 }
 0xe38   :  { %1538 = vrot.lane.b32.xlu1 %v2776_v20, %s2991_s29 }
 0xe3b   :  { %1381 = vrot.lane.b32.xlu0 %v2774_v42, %s2981_s20 }
 0xe40   :  { %1556 = vrot.lane.b32.xlu1 %v3245_v21, %s2990_s28 }
 0xe8a   :  { %v1291_v15 = vpop.xlane.xlu1 %1290 }
 0xe8b   :  { %v1295_v45 = vmul.f32 %v1291_v15, %v3051_v32 }
 0xe8d   :  { %v1297_v46 = vadd.f32 1e-05, %v1295_v45 }
 0xe8f   :  { %2884 = vrsqrt.f32 %v1297_v46  ;;  %vm1305_vm6 = vweird.f32 %v1297_v46 }
 0xe92   :  { %v1294_v47 = vpop.xlane.xlu0 %1293 }
 0xe93   :  { %v1296_v48 = vmul.f32 %v1294_v47, %v3051_v32 }
 0xe95   :  { %v2885_v50 = vpop.eup %2884  ;;  %v1298_v51 = vadd.f32 1e-05, %v1296_v48 }
 0xe96   :  { %v1300_v52 = vmul.f32 %v2885_v50, %v1297_v46  ;;  %vm1306_vm5 = vweird.f32 %v2885_v50 }
 0xe97   :  { %2886 = vrsqrt.f32 %v1298_v51  ;;  %vm1307_vm7 = vmor %vm1305_vm6, %vm1306_vm5  ;;  %vm1315_vm9 = vweird.f32 %v1298_v51 }
 0xe98   :  { %v1301_v53 = vmul.f32 %v2885_v50, %v1300_v52 }
 0xe9a   :  { %v1302_v49 = vmul.f32 0.5, %v1301_v53 }
 0xe9c   :  { %v1303_v27 = vsub.f32 1.5, %v1302_v49 }
 0xe9d   :  { %v2887_v54 = vpop.eup %2886 }
 0xe9e   :  { %v1304_v55 = vmul.f32 %v2885_v50, %v1303_v27  ;;  %v1310_v34 = vmul.f32 %v2887_v54, %v1298_v51  ;;  %vm1316_vm8 = vweird.f32 %v2887_v54 }
 0xe9f   :  { %vm1317_vm10 = vmor %vm1315_vm9, %vm1316_vm8 }
 0xea0   :  { %v1311_v56 = vmul.f32 %v2887_v54, %v1310_v34  ;;  %v1308_v57 = vsel %vm1307_vm7, %v2885_v50, %v1304_v55 }
 0xea1   :  { %v1319_v61 = vmul.f32 %v1308_v57, %v1285_v37 }
 0xea2   :  { %v1312_v58 = vmul.f32 0.5, %v1311_v56  ;;  %v1559_v29 = vpop.permute.xlu1 %1558  ;;  %v2778_v56 = vld [vmem:[#allocation2 + $0xa8] sm:$0xff] }
 0xea3   :  { %v1322_v2 = vmul.f32 %v2832_v60, %v1319_v61 }
 0xea4   :  { %v1313_v59 = vsub.f32 1.5, %v1312_v58 }
 0xea5   :  { %v1362_v62 = vpop.permute.xlu0 %1361  ;;  %v1325_v5 = vadd.f32 %v2833_v1, %v1322_v2 }
 0xea6   :  { %v1314_v63 = vmul.f32 %v2887_v54, %v1313_v59  ;;  %1374 = vmatpush.bf16.msra.mxu3 %v1362_v62 }
 0xea8   :  { %v1318_v0 = vsel %vm1317_vm10, %v2887_v54, %v1314_v63 }
 0xea9   :  { %v1320_v3 = vmul.f32 %v1318_v0, %v1286_v13  ;;  %v2777_v0 = vld [vmem:[#allocation2 + $0xa0] sm:$0xff] }
 0xeaa   :  { %v1539_v18 = vpop.permute.xlu1 %1538 }
 0xeab   :  { %v1323_v4 = vmul.f32 %v2832_v60, %v1320_v3 }
 0xead   :  { %v1326_v6 = vadd.f32 %v2833_v1, %v1323_v4  ;;  %v1382_v7 = vpop.permute.xlu0 %1381  ;;  %v2799_v1 = vunpack.c.l.b16 %v3245_v21 }
 0xeae   :  { %1394 = vmatpush.bf16.msra.mxu0 %v1382_v7 }
 0xeaf   :  { %v3231_v8 = vpack.c.bf16 %v1326_v6, %v1325_v5  ;;  %v1743_v2 = vpack.c.b16 %v2799_v1, %v2799_v1 }
 0xeb1   :  { %2639 = vmatmul.msk.bf16.vlgmr.msra.gmra.mxu2 %vm151_vm3, %v3231_v8  ;;  %2640 = vmatmul.msk.bf16.vlgmr.msra.gmra.mxu3 %vm151_vm3, %v3231_v8 }
 0xeb2   :  { %2641 = vmatmul.msk.bf16.vlgmr.msra.gmra.mxu0 %vm151_vm3, %v3231_v8  ;;  %v1557_v13 = vpop.permute.xlu1 %1556 }
 0xf2f   :  { %v1396_v9 = vpop.f32.mrf.mxu0 }
 0xf30   :  { %1493 = vmatpush.msrb.mxu3 %v1396_v9 }
 0xf32   :  { %1568 = vmatpush.bf16.msra.mxu3 %v1559_v29 }
 0xf34   :  { %v1376_v10 = vpop.f32.mrf.mxu3  ;;  %v1356_v11 = vpop.f32.mrf.mxu2 }
 0xf35   :  { %2642 = vmatpush.xpose.msk.msrb.mxu2 %vm283_vm11, %v1376_v10 }
 0xf36   :  { %1569 = vmatpush.bf16.msra.mxu3 %v1557_v13 }
 0xf37   :  { %v1398_v14 = vpop.f32.mrf.mxu0 }
 0xf38   :  { %1516 = vmatpush.msrb.mxu0 %v1398_v14  ;;  %2643 = vmatmul.msk.f32.vlgmr.msrb.gmra.mxu2 %vm283_vm11, %v1356_v11 }
 0xf3c   :  { %v1378_v16 = vpop.f32.mrf.mxu3  ;;  %v1358_v17 = vpop.f32.mrf.mxu2 }
 0xf3d   :  { %2644 = vmatpush.xpose.msk.msra.mxu2 %vm283_vm11, %v1378_v16 }
 0xf40   :  { %2645 = vmatmul.msk.f32.vlgmr.msra.gmra.mxu2 %vm283_vm11, %v1358_v17 }
 0xf41   :  { %1548 = vmatpush.bf16.msrb.mxu2 %v1539_v18  ;;  %v3288_v18 = vld [vmem:[#allocation2 + $0xa4] sm:$0xff]  }
 0xfbb   :  { %v1424_v23 = vpop.f32.mrf.mxu2 }
 0xfbc   :  { %v1425_v24 = vadd.f32 %v1424_v23, %v3090_v30 }
 0xfbe   :  { %v1453_v26 = vsel %vm283_vm11, %v1425_v24, -inf }
 0xfbf   :  { %1454 = vmax.xlane.f32.xlu2 %v1453_v26 }
 0xfc3   :  { %v1450_v38 = vpop.f32.mrf.mxu2 }
 0xfc4   :  { %v1451_v39 = vadd.f32 %v1450_v38, %v3090_v30 }
 0xfc6   :  { %v1456_v12 = vsel %vm283_vm11, %v1451_v39, -inf }
 0xfd7   :  { %1536 = vrot.lane.b32.xlu2 %v3245_v21, %s2991_s29 }
 0xfdf   :  { %1576 = vrot.lane.b32.xlu2 %v3245_v21, %s2993_s30 }
0x1032   :  { %v1455_v31 = vpop.xlane.xlu2 %1454 }
0x1033   :  { %v1459_v35 = vsub.f32 %v1425_v24, %v1455_v31  ;;  %v1719_v31 = vunpack.c.l.b16 %v3288_v18 }
0x1035   :  { %v1461_v36 = vmul.f32 1.442695, %v1459_v35 }
0x1037   :  { %2888 = vpow2.f32 %v1461_v36 }
0x103a   :  { %v1537_v22 = vpop.permute.xlu2 %1536 }
0x103b   :  { %1549 = vmatpush.bf16.msrb.mxu2 %v1537_v22 }
0x103d   :  { %v2889_v37 = vpop.eup %2888 }
0x103e   :  { %2652 = vmatmul.msk.bf16.vlgmr.msrb.gmra.mxu2 %vm151_vm3, %v3231_v8  ;;  %v1465_v19 = vsel %vm283_vm11, %v2889_v37, 0.0 }
0x103f   :  { %1466 = vadd.xlane.f32.xlu0 %v1465_v19 }
0x1042   :  { %v1577_v47 = vpop.permute.xlu2 %1576 }
0x1047   :  { %1457 = vmax.xlane.f32.xlu0 %v1456_v12 }
0x105b   :  { %1578 = vrot.lane.b32.xlu0 %v2776_v20, %s2993_s30 }
0x10b2   :  { %v1467_v25 = vpop.xlane.xlu0 %1466 }
0x10b3   :  { %2890 = vrcp.f32 %v1467_v25 }
0x10b9   :  { %v2891_v40 = vpop.eup %2890 }
0x10ba   :  { %v1473_v41 = vmul.f32 %v2891_v40, %v2889_v37  ;;  %v1458_v42 = vpop.xlane.xlu0 %1457  ;;  %v1720_v37 = vpack.c.b16 %v1719_v31, %v1719_v31 }
0x10bb   :  { %v1460_v43 = vsub.f32 %v1451_v39, %v1458_v42 }
0x10bc   :  { %2646 = vmatmul.msk.f32.vlgmr.msrb.gmra.mxu3 %vm283_vm11, %v1473_v41 }
0x10bd   :  { %v1463_v15 = vmul.f32 1.442695, %v1460_v43 }
0x10bf   :  { %2892 = vpow2.f32 %v1463_v15 }
0x10c1   :  { %v1551_v49 = vpop.f32.mrf.mxu2 }
0x10c4   :  { %2653 = vmatmul.msk.bf16.vlgmr.msra.gmra.mxu3 %vm151_vm3, %v3231_v8 }
0x10c5   :  { %v2893_v44 = vpop.eup %2892 }
0x10c6   :  { %v1468_v45 = vsel %vm283_vm11, %v2893_v44, 0.0 }
0x10c7   :  { %1469 = vadd.xlane.f32.xlu1 %v1468_v45 }
0x10c9   :  { %v1553_v54 = vpop.f32.mrf.mxu2 }
0x10cd   :  { %v1579_v46 = vpop.permute.xlu0 %1578 }
0x10ce   :  { %1588 = vmatpush.bf16.msra.mxu0 %v1579_v46 }
0x10d2   :  { %1589 = vmatpush.bf16.msra.mxu0 %v1577_v47 }
0x10e0   :  { %1802 = vrot.lane.b32.xlu1 %v2778_v56, %s2995_s5 }
0x113a   :  { %v1470_v48 = vpop.xlane.xlu1 %1469 }
0x113b   :  { %2894 = vrcp.f32 %v1470_v48 }
0x113f   :  { %v1495_v50 = vpop.f32.mrf.mxu3 }
0x1141   :  { %v2895_v51 = vpop.eup %2894 }
0x1142   :  { %v1474_v52 = vmul.f32 %v2895_v51, %v2893_v44 }
0x1144   :  { %2647 = vmatmul.msk.f32.vlgmr.msrb.gmra.mxu0 %vm283_vm11, %v1474_v52 }
0x1147   :  { %v1571_v53 = vpop.f32.mrf.mxu3 }
0x1148   :  { %2655 = vmatpush.xpose.msk.msrb.mxu1 %vm283_vm11, %v1571_v53 }
0x114b   :  { %2656 = vmatmul.msk.f32.vlgmr.msrb.gmra.mxu1 %vm283_vm11, %v1551_v49 }
0x114c   :  { %2654 = vmatmul.msk.bf16.vlgmr.msra.gmra.mxu0 %vm151_vm3, %v3231_v8 }
0x114f   :  { %v1573_v27 = vpop.f32.mrf.mxu3 }
0x1150   :  { %2657 = vmatpush.xpose.msk.msra.mxu1 %vm283_vm11, %v1573_v27 }
0x1152   :  { %v1803_v14 = vpop.permute.xlu1 %1802 }
0x1153   :  { %2658 = vmatmul.msk.f32.vlgmr.msra.gmra.mxu1 %vm283_vm11, %v1553_v54 }
0x11c1   :  { %v1518_v55 = vpop.f32.mrf.mxu0 }
0x11c2   :  { %v1521_v24 = vpack.c.bf16 %v1518_v55, %v1495_v50  ;;  %v2780_v50 = vld [vmem:[#allocation2 + $0xa8] sm:$0xff] }
0x11c8   :  { %v1619_v34 = vpop.f32.mrf.mxu1 }
0x11c9   :  { %v1620_v57 = vadd.f32 %v1619_v34, %v3090_v30  ;;  %v1591_v58 = vpop.f32.mrf.mxu0 }
0x11ca   :  { %1688 = vmatpush.msra.mxu2 %v1591_v58 }
0x11cb   :  { %v1648_v59 = vsel %vm283_vm11, %v1620_v57, -inf }
0x11cc   :  { %1649 = vmax.xlane.f32.xlu0 %v1648_v59 }
0x11d0   :  { %v1645_v60 = vpop.f32.mrf.mxu1 }
0x11d1   :  { %v1646_v61 = vadd.f32 %v1645_v60, %v3090_v30  ;;  %v1593_v62 = vpop.f32.mrf.mxu0 }
0x11d2   :  { %1711 = vmatpush.msrb.mxu3 %v1593_v62 }
0x11d3   :  { %v1651_v63 = vsel %vm283_vm11, %v1646_v61, -inf }
0x11d4   :  { %1652 = vmax.xlane.f32.xlu2 %v1651_v63  ;;  %1812 = vmatpush.bf16.msra.mxu3 %v1803_v14 }
0x11e0   :  { %1800 = vrot.lane.b32.xlu0 %v2777_v0, %s2995_s5 }
0x11e8   :  { %1744 = vrot.lane.b32.xlu0 %v1743_v2, %s2994_s4 }
0x11ec   :  { %1782 = vrot.lane.b32.xlu2 %v2778_v56, %s2996_s6 }
0x11f0   :  { %1820 = vrot.lane.b32.xlu0 %v2777_v0, %s2997_s7 }
0x11f4   :  { %1721 = vrot.lane.b32.xlu2 %v1720_v37, %s2994_s4 }
0x11f8   :  { %2025 = vrot.lane.b32.xlu0 %v2780_v50, %s2998_s8 }
0x123f   :  { %v1650_v3 = vpop.xlane.xlu0 %1649 }
0x1240   :  { %v1654_v4 = vsub.f32 %v1620_v57, %v1650_v3 }
0x1242   :  { %v1656_v5 = vmul.f32 1.442695, %v1654_v4 }
0x1244   :  { %2896 = vpow2.f32 %v1656_v5 }
0x1247   :  { %v1653_v6 = vpop.xlane.xlu2 %1652 }
0x1248   :  { %v1655_v7 = vsub.f32 %v1646_v61, %v1653_v6  ;;  %v2779_v6 = vld [vmem:[#allocation2 + $0xa0] sm:$0xff] }
0x124a   :  { %v2897_v9 = vpop.eup %2896  ;;  %v1658_v10 = vmul.f32 1.442695, %v1655_v7 }
0x124b   :  { %v1660_v11 = vsel %vm283_vm11, %v2897_v9, 0.0 }
0x124c   :  { %2898 = vpow2.f32 %v1658_v10  ;;  %1661 = vadd.xlane.f32.xlu1 %v1660_v11 }
0x124f   :  { %v1783_v26 = vpop.permute.xlu2 %1782 }
0x1250   :  { %1792 = vmatpush.bf16.msrb.mxu2 %v1783_v26 }
0x1252   :  { %v2899_v16 = vpop.eup %2898  ;;  %v1801_v17 = vpop.permute.xlu0 %1800 }
0x1253   :  { %v1663_v20 = vsel %vm283_vm11, %v2899_v16, 0.0  ;;  %1813 = vmatpush.bf16.msra.mxu3 %v1801_v17 }
0x1254   :  { %1664 = vadd.xlane.f32.xlu1 %v1663_v20 }
0x1257   :  { %v1722_v12 = vpop.permute.xlu2 %1721 }
0x1258   :  { %v1727_v13 = vsel %vm609_vm13, %v1722_v12, 0 }
0x1259   :  { %1736 = vmatpush.bf16.msrb.mxu0 %v1727_v13 }
0x125a   :  { %v1745_v21 = vpop.permute.xlu0 %1744 }
0x125b   :  { %v1750_v23 = vsel %vm609_vm13, %v1745_v21, 0 }
0x125c   :  { %1759 = vmatpush.bf16.msrb.mxu1 %v1750_v23 }
0x125f   :  { %2662 = vmatmul.msk.bf16.vlgmr.msrb.gmra.mxu1 %vm283_vm11, %v1521_v24 }
0x1262   :  { %v1821_v40 = vpop.permute.xlu0 %1820 }
0x126a   :  { %v2026_v5 = vpop.permute.xlu0 %2025 }
0x126d   :  { %1780 = vrot.lane.b32.xlu1 %v2777_v0, %s2996_s6 }
0x1275   :  { %1822 = vrot.lane.b32.xlu1 %v2778_v56, %s2997_s7 }
0x12bf   :  { %v1662_v29 = vpop.xlane.xlu1 %1661 }
0x12c0   :  { %2900 = vrcp.f32 %v1662_v29 }
0x12c6   :  { %v2901_v35 = vpop.eup %2900 }
0x12c7   :  { %v1668_v36 = vmul.f32 %v2901_v35, %v2897_v9  ;;  %v1665_v22 = vpop.xlane.xlu1 %1664  ;;  %v1963_v9 = vunpack.c.h.b16 %v3288_v18 }
0x12c8   :  { %2902 = vrcp.f32 %v1665_v22 }
0x12c9   :  { %2659 = vmatmul.msk.f32.vlgmr.msra.gmra.mxu2 %vm283_vm11, %v1668_v36  ;;  %v1964_v10 = vpack.c.b16 %v1963_v9, %v1963_v9 }
0x12ce   :  { %v2903_v19 = vpop.eup %2902 }
0x12cf   :  { %v1669_v38 = vmul.f32 %v2903_v19, %v2899_v16 }
0x12d1   :  { %2660 = vmatmul.msk.f32.vlgmr.msrb.gmra.mxu3 %vm283_vm11, %v1669_v38 }
0x12d9   :  { %2672 = vmatmul.msk.bf16.vlgmr.msra.gmra.mxu3 %vm151_vm3, %v3231_v8 }
0x12dc   :  { %v3306_v47 = vpop.f32.mrf.mxu1 }
0x12df   :  { %v1781_v39 = vpop.permute.xlu1 %1780 }
0x12e0   :  { %1793 = vmatpush.bf16.msrb.mxu2 %v1781_v39 }
0x12e3   :  { %2671 = vmatmul.msk.bf16.vlgmr.msrb.gmra.mxu2 %vm151_vm3, %v3231_v8 }
0x12e4   :  { %v1763_v51 = vpop.f32.mrf.mxu1 }
0x12e7   :  { %v1823_v25 = vpop.permute.xlu1 %1822 }
0x12e8   :  { %1832 = vmatpush.bf16.msra.mxu0 %v1823_v25 }
0x12ec   :  { %1833 = vmatpush.bf16.msra.mxu0 %v1821_v40 }
0x134c   :  { %v1690_v41 = vpop.f32.mrf.mxu2 }
0x1354   :  { %v1713_v42 = vpop.f32.mrf.mxu3 }
0x1355   :  { %v1716_v43 = vpack.c.bf16 %v1713_v42, %v1690_v41 }
0x1357   :  { %2661 = vmatmul.msk.bf16.vlgmr.msrb.gmra.mxu0 %vm283_vm11, %v1716_v43 }
0x1358   :  { %2035 = vmatpush.bf16.msrb.mxu0 %v2026_v5 }
0x135c   :  { %v1815_v15 = vpop.f32.mrf.mxu3 }
0x135d   :  { %2674 = vmatpush.xpose.msk.msra.mxu1 %vm283_vm11, %v1815_v15 }
0x1364   :  { %v1817_v44 = vpop.f32.mrf.mxu3 }
0x1365   :  { %2676 = vmatpush.xpose.msk.msra.mxu2 %vm283_vm11, %v1817_v44 }
0x1366   :  { %v1795_v45 = vpop.f32.mrf.mxu2 }
0x1367   :  { %2673 = vmatmul.msk.bf16.vlgmr.msra.gmra.mxu0 %vm151_vm3, %v3231_v8  ;;  %2675 = vmatmul.msk.f32.vlgmr.msra.gmra.mxu1 %vm283_vm11, %v1795_v45 }
0x136e   :  { %v1797_v46 = vpop.f32.mrf.mxu2 }
0x136f   :  { %2677 = vmatmul.msk.f32.vlgmr.msra.gmra.mxu2 %vm283_vm11, %v1797_v46 }
0x13d4   :  { %v3308_v48 = vpop.f32.mrf.mxu0 }
0x13d5   :  { %v1762_v13 = vadd.f32 %v3306_v47, %v3308_v48 }
0x13dc   :  { %v1740_v52 = vpop.f32.mrf.mxu0 }
0x13dd   :  { %v3311_v53 = vadd.f32 %v1763_v51, %v1740_v52 }
0x13e4   :  { %v1835_v49 = vpop.f32.mrf.mxu0  ;;  %v1863_v27 = vpop.f32.mrf.mxu1 }
0x13e5   :  { %v1864_v54 = vadd.f32 %v1863_v27, %v3090_v30  ;;  %1932 = vmatpush.msrb.mxu3 %v1835_v49 }
0x13e7   :  { %v1892_v55 = vsel %vm283_vm11, %v1864_v54, -inf }
0x13e8   :  { %1893 = vmax.xlane.f32.xlu2 %v1892_v55 }
0x13ec   :  { %v1837_v34 = vpop.f32.mrf.mxu0 }
0x13ed   :  { %1955 = vmatpush.msrb.mxu1 %v1837_v34  ;;  %v2184_v34 = vld [vmem:[#allocation2 + $0xac] sm:$0xf] }
0x13f2   :  { %v1889_v56 = vpop.f32.mrf.mxu2 }
0x13f3   :  { %v1890_v57 = vadd.f32 %v1889_v56, %v3090_v30  ;;  %v2186_v56 = vunpack.c.l.b16 %v2184_v34  ;;  %v2836_v34 = vld [vmem:[#allocation4 + $0x1b] ss:$0 sm:$0xff] }
0x13f5   :  { %v1895_v58 = vsel %vm283_vm11, %v1890_v57, -inf }
0x13f6   :  { %1896 = vmax.xlane.f32.xlu1 %v1895_v58 }
0x140f   :  { %2005 = vrot.lane.b32.xlu1 %v2780_v50, %s2999_s9 }
0x1417   :  { %1965 = vrot.lane.b32.xlu1 %v1964_v10, %s2994_s4 }
0x145b   :  { %v1894_v59 = vpop.xlane.xlu2 %1893 }
0x145c   :  { %v1898_v60 = vsub.f32 %v1864_v54, %v1894_v59 }
0x145e   :  { %v1900_v61 = vmul.f32 1.442695, %v1898_v60 }
0x1460   :  { %2904 = vpow2.f32 %v1900_v61 }
0x1466   :  { %v2905_v62 = vpop.eup %2904 }
0x1467   :  { %v1904_v63 = vsel %vm283_vm11, %v2905_v62, 0.0 }
0x1468   :  { %1905 = vadd.xlane.f32.xlu0 %v1904_v63 }
0x1469   :  { %v1897_v0 = vpop.xlane.xlu1 %1896 }
0x146a   :  { %v1899_v1 = vsub.f32 %v1890_v57, %v1897_v0  ;;  %v2187_v57 = vpack.c.b16 %v2186_v56, %v2186_v56 }
0x146c   :  { %v1902_v2 = vmul.f32 1.442695, %v1899_v1 }
0x146e   :  { %2906 = vpow2.f32 %v1902_v2 }
0x1474   :  { %v2907_v3 = vpop.eup %2906 }
0x1475   :  { %v1907_v4 = vsel %vm283_vm11, %v2907_v3, 0.0 }
0x1476   :  { %1908 = vadd.xlane.f32.xlu2 %v1907_v4 }
0x147c   :  { %2023 = vrot.lane.b32.xlu0 %v2779_v6, %s2998_s8 }
0x1481   :  { %v2006_v7 = vpop.permute.xlu1 %2005 }
0x1482   :  { %2015 = vmatpush.bf16.msra.mxu3 %v2006_v7  ;;  %v2834_v7 = vld [vmem:[#allocation4 + $0x19] ss:$0 sm:$0xff] }
0x1484   :  { %2043 = vrot.lane.b32.xlu0 %v2779_v6, %s3000_s10 }
0x1489   :  { %v1966_v18 = vpop.permute.xlu1 %1965 }
0x148a   :  { %v1971_v31 = vsel %vm609_vm13, %v1966_v18, 0 }
0x148b   :  { %1980 = vmatpush.bf16.msrb.mxu2 %v1971_v31 }
0x148e   :  { %2003 = vrot.lane.b32.xlu2 %v2779_v6, %s2999_s9 }
0x1496   :  { %2045 = vrot.lane.b32.xlu2 %v2780_v50, %s3000_s10 }
0x14db   :  { %v1906_v11 = vpop.xlane.xlu0 %1905 }
0x14dc   :  { %2908 = vrcp.f32 %v1906_v11 }
0x14e2   :  { %v2909_v14 = vpop.eup %2908 }
0x14e3   :  { %v1912_v16 = vmul.f32 %v2909_v14, %v2905_v62 }
0x14e5   :  { %2678 = vmatmul.msk.f32.vlgmr.msrb.gmra.mxu3 %vm283_vm11, %v1912_v16 }
0x14e9   :  { %v1909_v17 = vpop.xlane.xlu2 %1908 }
0x14ea   :  { %2910 = vrcp.f32 %v1909_v17 }
0x14ee   :  { %v2024_v20 = vpop.permute.xlu0 %2023 }
0x14ef   :  { %2036 = vmatpush.bf16.msrb.mxu0 %v2024_v20 }
0x14f0   :  { %v2911_v21 = vpop.eup %2910 }
0x14f1   :  { %v1913_v23 = vmul.f32 %v2911_v21, %v2907_v3  ;;  %v2004_v24 = vpop.permute.xlu2 %2003 }
0x14f2   :  { %2016 = vmatpush.bf16.msra.mxu3 %v2004_v24  ;;  %2690 = vmatmul.msk.bf16.vlgmr.msrb.gmra.mxu0 %vm151_vm3, %v3231_v8 }
0x14f3   :  { %2679 = vmatmul.msk.f32.vlgmr.msrb.gmra.mxu1 %vm283_vm11, %v1913_v23 }
0x14f5   :  { %2689 = vmatmul.msk.bf16.vlgmr.msra.gmra.mxu3 %vm151_vm3, %v3231_v8 }
0x14f6   :  { %v2044_v29 = vpop.permute.xlu0 %2043 }
0x14f9   :  { %v2046_v26 = vpop.permute.xlu2 %2045 }
0x14fa   :  { %2055 = vmatpush.bf16.msra.mxu1 %v2046_v26 }
0x14fe   :  { %2056 = vmatpush.bf16.msra.mxu1 %v2044_v29 }
0x1501   :  { %2691 = vmatmul.msk.bf16.vlgmr.msra.gmra.mxu1 %vm151_vm3, %v3231_v8 }
0x1568   :  { %v1934_v36 = vpop.f32.mrf.mxu3 }
0x156f   :  { %v2038_v35 = vpop.f32.mrf.mxu0 }
0x1570   :  { %v1957_v22 = vpop.f32.mrf.mxu1  ;;  %2692 = vmatpush.xpose.msk.msra.mxu2 %vm283_vm11, %v2038_v35 }
0x1571   :  { %v1960_v37 = vpack.c.bf16 %v1957_v22, %v1934_v36  ;;  %v2782_v22 = vld [vmem:[#allocation2 + $0xb8] sm:$0xff] }
0x1573   :  { %2680 = vmatmul.msk.bf16.vlgmr.msrb.gmra.mxu2 %vm283_vm11, %v1960_v37 }
0x1577   :  { %v2040_v19 = vpop.f32.mrf.mxu0 }
0x1578   :  { %v2018_v38 = vpop.f32.mrf.mxu3  ;;  %2694 = vmatpush.xpose.msk.msrb.mxu3 %vm283_vm11, %v2040_v19 }
0x157c   :  { %2298 = vmatpush.bf16.msra.mxu3 %v2782_v22 }
0x157e   :  { %v2058_v39 = vpop.f32.mrf.mxu1 }
0x157f   :  { %2155 = vmatpush.msra.mxu0 %v2058_v39  ;;  %v2781_v39 = vld [vmem:[#allocation2 + $0xb0] sm:$0xff] }
0x1580   :  { %v2020_v12 = vpop.f32.mrf.mxu3  ;;  %2299 = vmatpush.bf16.msra.mxu3 %v2781_v39 }
0x1581   :  { %2695 = vmatmul.msk.f32.vlgmr.msrb.gmra.mxu3 %vm283_vm11, %v2020_v12  ;;  %v2790_v12 = vld [vmem:[#allocation2 + $0xf8] sm:$0xff] }
0x1582   :  { %2374 = vmatpush.bf16.msrb.mxu0 %v2790_v12 }
0x1583   :  { %2693 = vmatmul.msk.f32.vlgmr.msra.gmra.mxu2 %vm283_vm11, %v2018_v38 }
0x1586   :  { %v2060_v8 = vpop.f32.mrf.mxu1 }
0x1587   :  { %2178 = vmatpush.msrb.mxu1 %v2060_v8 }
0x15f6   :  { %v1982_v25 = vpop.f32.mrf.mxu2 }
0x15f7   :  { %v1987_v40 = vadd.f32 %v1982_v25, %v1762_v13  ;;  %v2789_v25 = vld [vmem:[#allocation2 + $0xf0] sm:$0xff] }
0x15f8   :  { %2375 = vmatpush.bf16.msrb.mxu0 %v2789_v25 }
0x15fe   :  { %v1984_v41 = vpop.f32.mrf.mxu2 }
0x15ff   :  { %v1988_v42 = vadd.f32 %v1984_v41, %v3311_v53 }
0x1604   :  { %v2112_v43 = vpop.f32.mrf.mxu3 }
0x1605   :  { %v2113_v15 = vadd.f32 %v2112_v43, %v3090_v30  ;;  %v2788_v43 = vld [vmem:[#allocation2 + $0xe8] sm:$0xff] }
0x1606   :  { %v2086_v44 = vpop.f32.mrf.mxu2  ;;  %2376 = vmatpush.bf16.msrb.mxu0 %v2788_v43 }
0x1607   :  { %v2087_v45 = vadd.f32 %v2086_v44, %v3090_v30  ;;  %v2118_v46 = vsel %vm283_vm11, %v2113_v15, -inf }
0x1608   :  { %2119 = vmax.xlane.f32.xlu2 %v2118_v46 }
0x1609   :  { %v2115_v50 = vsel %vm283_vm11, %v2087_v45, -inf }
0x160a   :  { %2116 = vmax.xlane.f32.xlu1 %v2115_v50 }
0x1620   :  { %2188 = vrot.lane.b32.xlu2 %v2187_v57, %s2994_s4 }
0x167b   :  { %v2120_v51 = vpop.xlane.xlu2 %2119 }
0x167c   :  { %v2122_v52 = vsub.f32 %v2113_v15, %v2120_v51 }
0x167d   :  { %v2117_v47 = vpop.xlane.xlu1 %2116 }
0x167e   :  { %v2125_v48 = vmul.f32 1.442695, %v2122_v52  ;;  %v2121_v49 = vsub.f32 %v2087_v45, %v2117_v47  ;;  %v2787_v45 = vld [vmem:[#allocation2 + $0xe0] sm:$0xff] }
0x167f   :  { %2377 = vmatpush.bf16.msrb.mxu0 %v2787_v45 }
0x1680   :  { %2912 = vpow2.f32 %v2125_v48  ;;  %v2123_v27 = vmul.f32 1.442695, %v2121_v49 }
0x1682   :  { %2914 = vpow2.f32 %v2123_v27 }
0x1683   :  { %v2189_v0 = vpop.permute.xlu2 %2188 }
0x1684   :  { %v2194_v1 = vsel %vm609_vm13, %v2189_v0, 0  ;;  %v2784_v0 = vld [vmem:[#allocation2 + $0xc8] sm:$0xff] }
0x1685   :  { %2203 = vmatpush.bf16.msrb.mxu2 %v2194_v1  ;;  %v2783_v1 = vld [vmem:[#allocation2 + $0xc0] sm:$0xff] }
0x1686   :  { %v2913_v53 = vpop.eup %2912 }
0x1687   :  { %v2130_v54 = vsel %vm283_vm11, %v2913_v53, 0.0 }
0x1688   :  { %v2915_v55 = vpop.eup %2914  ;;  %2131 = vadd.xlane.f32.xlu1 %v2130_v54 }
0x1689   :  { %v2127_v30 = vsel %vm283_vm11, %v2915_v55, 0.0 }
0x168a   :  { %2128 = vadd.xlane.f32.xlu0 %v2127_v30 }
0x16fb   :  { %v2132_v58 = vpop.xlane.xlu1 %2131 }
0x16fc   :  { %2916 = vrcp.f32 %v2132_v58 }
0x16fd   :  { %v2129_v59 = vpop.xlane.xlu0 %2128 }
0x16fe   :  { %2918 = vrcp.f32 %v2129_v59 }
0x1702   :  { %v2917_v60 = vpop.eup %2916 }
0x1703   :  { %v2136_v61 = vmul.f32 %v2917_v60, %v2913_v53  ;;  %v2835_v53 = vld [vmem:[#allocation4 + $0x1a] ss:$0 sm:$0xff] }
0x1704   :  { %v2919_v62 = vpop.eup %2918 }
0x1705   :  { %v2135_v63 = vmul.f32 %v2919_v62, %v2915_v55  ;;  %2697 = vmatmul.msk.f32.vlgmr.msrb.gmra.mxu1 %vm283_vm11, %v2136_v61  ;;  %v2786_v62 = vld [vmem:[#allocation2 + $0xd8] sm:$0xff] }
0x1706   :  { %2378 = vmatpush.bf16.msrb.mxu0 %v2786_v62 }
0x1707   :  { %2696 = vmatmul.msk.f32.vlgmr.msra.gmra.mxu0 %vm283_vm11, %v2135_v63  ;;  %v2785_v63 = vld [vmem:[#allocation2 + $0xd0] sm:$0xff] }
0x170a   :  { %2379 = vmatpush.bf16.msrb.mxu0 %v2785_v63 }
0x170e   :  { %2380 = vmatpush.bf16.msrb.mxu0 %v2784_v0 }
0x1712   :  { %2381 = vmatpush.bf16.msrb.mxu0 %v2783_v1 }
0x1782   :  { %v2180_v2 = vpop.f32.mrf.mxu1 }
0x1784   :  { %v2157_v3 = vpop.f32.mrf.mxu0 }
0x1785   :  { %v2183_v4 = vpack.c.bf16 %v2180_v2, %v2157_v3  ;;  %v2837_v3 = vld [vmem:[#allocation4 + $0x1d] ss:$0 sm:$0xff] }
0x1787   :  { %2698 = vmatmul.msk.bf16.vlgmr.msrb.gmra.mxu2 %vm283_vm11, %v2183_v4 }
0x180a   :  { %v2205_v5 = vpop.f32.mrf.mxu2 }
0x180b   :  { %v2210_v6 = vadd.f32 %v2205_v5, %v1987_v40 }
0x180d   :  { %v2212_v9 = vadd.f32 %v2210_v6, %v3210_v28 }
0x180f   :  { %v3355_v10 = vadd.f32 %v2834_v7, %v2212_v9 }
0x1811   :  { %v2221_v11 = vsel %vm151_vm3, %v3355_v10, 0.0 }
0x1812   :  { %2222 = vadd.xlane.f32.xlu0 %v2221_v11  ;;  %v2207_v14 = vpop.f32.mrf.mxu2 }
0x1813   :  { %v2211_v16 = vadd.f32 %v2207_v14, %v1988_v42  ;;  %v2838_v14 = vld [vmem:[#allocation4 + $0x1c] ss:$0 sm:$0xff] }
0x1815   :  { %v2213_v17 = vadd.f32 %v2211_v16, %v3215_v33 }
0x1817   :  { %v3360_v20 = vadd.f32 %v2834_v7, %v2213_v17 }
0x1819   :  { %v2224_v21 = vsel %vm151_vm3, %v3360_v20, 0.0 }
0x181a   :  { %2225 = vadd.xlane.f32.xlu1 %v2224_v21 }
0x1885   :  { %v2223_v23 = vpop.xlane.xlu0 %2222 }
0x1886   :  { %v2227_v24 = vmul.f32 %v2223_v23, %v3051_v32 }
0x1888   :  { %v2229_v28 = vsub.f32 %v3355_v10, %v2227_v24 }
0x188a   :  { %v2231_v26 = vmul.f32 %v2229_v28, %v2229_v28 }
0x188c   :  { %v2233_v29 = vsel %vm151_vm3, %v2231_v26, 0.0 }
0x188d   :  { %2234 = vadd.xlane.f32.xlu0 %v2233_v29  ;;  %v2226_v18 = vpop.xlane.xlu1 %2225 }
0x188e   :  { %v2228_v31 = vmul.f32 %v2226_v18, %v3051_v32 }
0x1890   :  { %v2230_v33 = vsub.f32 %v3360_v20, %v2228_v31 }
0x1892   :  { %v2232_v35 = vmul.f32 %v2230_v33, %v2230_v33 }
0x1894   :  { %v2236_v36 = vsel %vm151_vm3, %v2232_v35, 0.0 }
0x1895   :  { %2237 = vadd.xlane.f32.xlu1 %v2236_v36 }
0x1900   :  { %v2235_v37 = vpop.xlane.xlu0 %2234 }
0x1901   :  { %v2239_v19 = vmul.f32 %v2235_v37, %v3051_v32 }
0x1903   :  { %v2241_v38 = vadd.f32 1e-05, %v2239_v19 }
0x1905   :  { %2920 = vrsqrt.f32 %v2241_v38  ;;  %vm2249_vm12 = vweird.f32 %v2241_v38 }
0x1908   :  { %v2238_v8 = vpop.xlane.xlu1 %2237 }
0x1909   :  { %v2240_v13 = vmul.f32 %v2238_v8, %v3051_v32 }
0x190b   :  { %v2921_v40 = vpop.eup %2920  ;;  %v2242_v41 = vadd.f32 1e-05, %v2240_v13  ;;  %v2791_v13 = vld [vmem:[#allocation2 + $0x100] sm:$0xff] }
0x190c   :  { %v2244_v42 = vmul.f32 %v2921_v40, %v2241_v38  ;;  %vm2250_vm11 = vweird.f32 %v2921_v40 }
0x190d   :  { %2922 = vrsqrt.f32 %v2242_v41  ;;  %vm2251_vm13 = vmor %vm2249_vm12, %vm2250_vm11  ;;  %vm2259_vm15 = vweird.f32 %v2242_v41 }
0x190e   :  { %v2245_v15 = vmul.f32 %v2921_v40, %v2244_v42 }
0x1910   :  { %v2246_v44 = vmul.f32 0.5, %v2245_v15 }
0x1912   :  { %v2247_v46 = vsub.f32 1.5, %v2246_v44 }
0x1913   :  { %v2923_v50 = vpop.eup %2922 }
0x1914   :  { %v2248_v51 = vmul.f32 %v2921_v40, %v2247_v46  ;;  %v2254_v52 = vmul.f32 %v2923_v50, %v2242_v41  ;;  %vm2260_vm14 = vweird.f32 %v2923_v50 }
0x1915   :  { %vm2261_vm0 = vmor %vm2259_vm15, %vm2260_vm14 }
0x1916   :  { %v2255_v47 = vmul.f32 %v2923_v50, %v2254_v52  ;;  %v2252_v48 = vsel %vm2251_vm13, %v2921_v40, %v2248_v51 }
0x1917   :  { %v2263_v54 = vmul.f32 %v2252_v48, %v2229_v28 }
0x1918   :  { %v2256_v49 = vmul.f32 0.5, %v2255_v47 }
0x1919   :  { %v2266_v56 = vmul.f32 %v2835_v53, %v2263_v54 }
0x191a   :  { %v2257_v27 = vsub.f32 1.5, %v2256_v49 }
0x191b   :  { %v2269_v59 = vadd.f32 %v2836_v34, %v2266_v56 }
0x191c   :  { %v2258_v55 = vmul.f32 %v2923_v50, %v2257_v27  ;;  %v2839_v27 = vld [vmem:[#allocation4 + $0x1e] ss:$0 sm:$0xff] }
0x191e   :  { %v2262_v30 = vsel %vm2261_vm0, %v2923_v50, %v2258_v55  ;;  %v2840_v55 = vld [vmem:[#allocation4 + $0x1f] ss:$0 sm:$0xff] }
0x191f   :  { %v2264_v57 = vmul.f32 %v2262_v30, %v2230_v33 }
0x1921   :  { %v2267_v58 = vmul.f32 %v2835_v53, %v2264_v57 }
0x1923   :  { %v2270_v60 = vadd.f32 %v2836_v34, %v2267_v58 }
0x1925   :  { %v2271_v61 = vpack.c.bf16 %v2270_v60, %v2269_v59  ;;  %v2841_v60 = vld [vmem:[#allocation4 + $0x20] ss:$0 sm:$0xff] }
0x1927   :  { %2707 = vmatmul.msk.bf16.vlgmr.msra.gmra.mxu3 %vm151_vm3, %v2271_v61 }
0x19aa   :  { %v2301_v2 = vpop.f32.mrf.mxu3 }
0x19ab   :  { %v2302_v4 = vadd.f32 %v2837_v3, %v2301_v2 }
0x19ad   :  { %v2306_v7 = vmax.f32 %v2302_v4, 0.0 }
0x19b2   :  { %v2303_v5 = vpop.f32.mrf.mxu3 }
0x19b3   :  { %v2304_v6 = vadd.f32 %v2837_v3, %v2303_v5 }
0x19b5   :  { %v2307_v9 = vmax.f32 %v2304_v6, 0.0 }
0x19b7   :  { %v2308_v11 = vpack.c.bf16 %v2307_v9, %v2306_v7 }
0x19b9   :  { %2382 = vmatmul.bf16.vlgmr.msrb.gmra.mxu0 %v2308_v11 }
0x1a36   :  { %v2383_v16 = vpop.f32.mrf.mxu0 }
0x1a37   :  { %v2384_v17 = vadd.f32 %v2838_v14, %v2383_v16 }
0x1a39   :  { %v2388_v21 = vadd.f32 %v2384_v17, %v3355_v10 }
0x1a3b   :  { %v2392_v23 = vsel %vm151_vm3, %v2388_v21, 0.0 }
0x1a3c   :  { %2393 = vadd.xlane.f32.xlu0 %v2392_v23 }
0x1a3e   :  { %v2385_v24 = vpop.f32.mrf.mxu0 }
0x1a3f   :  { %v2386_v28 = vadd.f32 %v2838_v14, %v2385_v24 }
0x1a41   :  { %v2389_v26 = vadd.f32 %v2386_v28, %v3360_v20  ;;  %v2792_v20 = vld [vmem:[#allocation2 + $0x108] sm:$0xff] }
0x1a42   :  { %2470 = vmatpush.bf16.msra.mxu1 %v2792_v20 }
0x1a43   :  { %v2395_v29 = vsel %vm151_vm3, %v2389_v26, 0.0 }
0x1a44   :  { %2396 = vadd.xlane.f32.xlu1 %v2395_v29 }
0x1a46   :  { %2471 = vmatpush.bf16.msra.mxu1 %v2791_v13 }
0x1aaf   :  { %v2394_v18 = vpop.xlane.xlu0 %2393 }
0x1ab0   :  { %v2398_v31 = vmul.f32 %v2394_v18, %v3051_v32 }
0x1ab2   :  { %v2400_v33 = vsub.f32 %v2388_v21, %v2398_v31 }
0x1ab4   :  { %v2402_v35 = vmul.f32 %v2400_v33, %v2400_v33 }
0x1ab6   :  { %v2404_v36 = vsel %vm151_vm3, %v2402_v35, 0.0 }
0x1ab7   :  { %v2397_v22 = vpop.xlane.xlu1 %2396  ;;  %2405 = vadd.xlane.f32.xlu2 %v2404_v36 }
0x1ab8   :  { %v2399_v10 = vmul.f32 %v2397_v22, %v3051_v32 }
0x1aba   :  { %v2401_v37 = vsub.f32 %v2389_v26, %v2399_v10 }
0x1abc   :  { %v2403_v19 = vmul.f32 %v2401_v37, %v2401_v37 }
0x1abe   :  { %v2407_v38 = vsel %vm151_vm3, %v2403_v19, 0.0 }
0x1abf   :  { %2408 = vadd.xlane.f32.xlu0 %v2407_v38 }
0x1b2a   :  { %v2406_v39 = vpop.xlane.xlu2 %2405 }
0x1b2b   :  { %v2410_v12 = vmul.f32 %v2406_v39, %v3051_v32 }
0x1b2d   :  { %v2412_v8 = vadd.f32 1e-05, %v2410_v12 }
0x1b2f   :  { %2924 = vrsqrt.f32 %v2412_v8  ;;  %vm2420_vm2 = vweird.f32 %v2412_v8 }
0x1b32   :  { %v2409_v25 = vpop.xlane.xlu0 %2408 }
0x1b33   :  { %v2411_v40 = vmul.f32 %v2409_v25, %v3051_v32 }
0x1b35   :  { %v2925_v41 = vpop.eup %2924  ;;  %v2413_v42 = vadd.f32 1e-05, %v2411_v40 }
0x1b36   :  { %v2415_v43 = vmul.f32 %v2925_v41, %v2412_v8  ;;  %vm2421_vm1 = vweird.f32 %v2925_v41 }
0x1b37   :  { %2926 = vrsqrt.f32 %v2413_v42  ;;  %vm2422_vm4 = vmor %vm2420_vm2, %vm2421_vm1  ;;  %vm2430_vm6 = vweird.f32 %v2413_v42 }
0x1b38   :  { %v2416_v15 = vmul.f32 %v2925_v41, %v2415_v43 }
0x1b3a   :  { %v2417_v44 = vmul.f32 0.5, %v2416_v15 }
0x1b3c   :  { %v2418_v45 = vsub.f32 1.5, %v2417_v44 }
0x1b3d   :  { %v2927_v46 = vpop.eup %2926 }
0x1b3e   :  { %v2419_v50 = vmul.f32 %v2925_v41, %v2418_v45  ;;  %v2425_v51 = vmul.f32 %v2927_v46, %v2413_v42  ;;  %vm2431_vm5 = vweird.f32 %v2927_v46 }
0x1b3f   :  { %vm2432_vm7 = vmor %vm2430_vm6, %vm2431_vm5 }
0x1b40   :  { %v2426_v52 = vmul.f32 %v2927_v46, %v2425_v51  ;;  %v2423_v47 = vsel %vm2422_vm4, %v2925_v41, %v2419_v50 }
0x1b41   :  { %v2434_v32 = vmul.f32 %v2423_v47, %v2400_v33 }
0x1b42   :  { %v2427_v48 = vmul.f32 0.5, %v2426_v52 }
0x1b43   :  { %v2437_v30 = vmul.f32 %v2839_v27, %v2434_v32 }
0x1b44   :  { %v2428_v49 = vsub.f32 1.5, %v2427_v48 }
0x1b45   :  { %v2440_v57 = vadd.f32 %v2840_v55, %v2437_v30 }
0x1b46   :  { %v2429_v53 = vmul.f32 %v2927_v46, %v2428_v49 }
0x1b48   :  { %v2433_v54 = vsel %vm2432_vm7, %v2927_v46, %v2429_v53 }
0x1b49   :  { %v2435_v34 = vmul.f32 %v2433_v54, %v2401_v37 }
0x1b4b   :  { %v2438_v56 = vmul.f32 %v2839_v27, %v2435_v34 }
0x1b4d   :  { %v2441_v58 = vadd.f32 %v2840_v55, %v2438_v56 }
0x1b4f   :  { %v2442_v59 = vpack.c.bf16 %v2441_v58, %v2440_v57 }
0x1b51   :  { %2748 = vmatmul.msk.bf16.vlgmr.msra.gmra.mxu1 %vm151_vm3, %v2442_v59 }
0x1bce   :  { %v2473_v61 = vpop.f32.mrf.mxu1 }
0x1bcf   :  { %v2474_v62 = vadd.f32 %v2841_v60, %v2473_v61 }
0x1bd1   :  { %2478 = vst [vmem:[%s3393_s3] sm:$0xff] %v2474_v62 }
0x1bd6   :  { %v2475_v63 = vpop.f32.mrf.mxu1 }
0x1bd7   :  { %v2476_v0 = vadd.f32 %v2841_v60, %v2475_v63 }
0x1bd9   :  { %2479 = vst [vmem:[%s3393_s3 + $0x8] sm:$0xff] %v2476_v0 }
0x1bda   :  { %2484 = vsyncpa [#allocation3], 1 }
0x1bdb   :  { %2485 = vsyncpa [#allocation5], 1 }

</bundles_post_ra>
